<compile_context>
chip_gen: v7x
topology: tpu7x:2x2x1
jax: 0.10.0
libtpu: 0.0.40
codegen_flags: <defaults>
</compile_context>

<pallas_src>
import math
import numpy as np
import jax
import jax.numpy as jnp
from jax import lax
from jax.experimental import pallas as pl
from jax.experimental.pallas import tpu as pltpu


# ----------------------------------------------------------------------------------
# helpers
# ----------------------------------------------------------------------------------
def _round_up(x, m):
    return ((x + m - 1) // m) * m


def _pad_rows(x, target):
    return jnp.pad(x, ((0, target - x.shape[0]), (0, 0)))


def _pad_cols(x, target):
    return jnp.pad(x, ((0, 0), (0, target - x.shape[1])))


def fourier_embed(x, num_freqs):
    """NeRF-style embedder: [x, sin(2^0 x), cos(2^0 x), ..., sin(2^{m-1} x), cos(2^{m-1} x)]."""
    outs = [x]
    for i in range(num_freqs):
        f = float(2.0 ** i)
        outs.append(jnp.sin(x * f))
        outs.append(jnp.cos(x * f))
    return jnp.concatenate(outs, axis=-1)


# ----------------------------------------------------------------------------------
# Kernel 1: fused positional-encoding MLP + full TransformerEncoder stack
# grid = (num_layers,), activation resident in the output block across layers.
# ----------------------------------------------------------------------------------
def _make_encoder_stack_kernel(S, U, D, H):
    dh = D // H
    scale = 1.0 / math.sqrt(dh)
    eps = 1e-5
    bf16 = jnp.bfloat16

    def kernel(agg_ref, pemb_ref, pw1_ref, pb1_ref, pw2_ref, pb2_ref,
               wqkv_ref, bqkv_ref, wo_ref, bo_ref,
               w1_ref, b1_ref, w2_ref, b2_ref,
               g1_ref, be1_ref, g2_ref, be2_ref, o_ref):
        layer = pl.program_id(0)

        @pl.when(layer == 0)
        def _init():
            # pos-encoding MLP: Linear -> LeakyReLU(0.01) -> (Dropout == id) -> Linear
            h = jnp.dot(pemb_ref[...].astype(bf16), pw1_ref[...],
                        preferred_element_type=jnp.float32) + pb1_ref[...]
            h = jnp.where(h >= 0.0, h, 0.01 * h)
            pos = jnp.dot(h.astype(bf16), pw2_ref[...],
                          preferred_element_type=jnp.float32) + pb2_ref[...]
            o_ref[...] = agg_ref[...] + pos

        x = o_ref[...]                              # [S, D] f32, resident across layers
        xb = x.astype(bf16)

        # fused QKV: one [D, 3D] matmul instead of three separate D->D projections
        qkv = jnp.dot(xb, wqkv_ref[...], preferred_element_type=jnp.float32) + bqkv_ref[...]

        key_mask = lax.broadcasted_iota(jnp.int32, (S, S), 1) < U   # mask padded keys

        ctxs = []
        for h in range(H):
            qh = qkv[:, h * dh:(h + 1) * dh].astype(bf16)
            kh = qkv[:, D + h * dh:D + (h + 1) * dh].astype(bf16)
            vh = qkv[:, 2 * D + h * dh:2 * D + (h + 1) * dh].astype(bf16)
            scores = jnp.dot(qh, kh.T, preferred_element_type=jnp.float32) * scale
            scores = jnp.where(key_mask, scores, -1e30)
            scores = scores - jnp.max(scores, axis=-1, keepdims=True)
            p = jnp.exp(scores)
            p = p * pl.reciprocal(jnp.sum(p, axis=-1, keepdims=True), approx=True)
            ctxs.append(jnp.dot(p.astype(bf16), vh, preferred_element_type=jnp.float32))
        ctx = jnp.concatenate(ctxs, axis=-1)                        # [S, D]
        attn = jnp.dot(ctx.astype(bf16), wo_ref[...],
                       preferred_element_type=jnp.float32) + bo_ref[...]

        # residual + LayerNorm1 (post-norm, eps=1e-5)
        y = x + attn
        mu = jnp.mean(y, axis=-1, keepdims=True)
        var = jnp.mean((y - mu) ** 2, axis=-1, keepdims=True)
        y = (y - mu) * lax.rsqrt(var + eps) * g1_ref[...] + be1_ref[...]

        # FFN (ReLU) + residual + LayerNorm2
        h1 = jnp.dot(y.astype(bf16), w1_ref[...],
                     preferred_element_type=jnp.float32) + b1_ref[...]
        h1 = jnp.maximum(h1, 0.0)
        ff = jnp.dot(h1.astype(bf16), w2_ref[...],
                     preferred_element_type=jnp.float32) + b2_ref[...]
        z = y + ff
        mu2 = jnp.mean(z, axis=-1, keepdims=True)
        var2 = jnp.mean((z - mu2) ** 2, axis=-1, keepdims=True)
        o_ref[...] = (z - mu2) * lax.rsqrt(var2 + eps) * g2_ref[...] + be2_ref[...]

    return kernel


def pallas_encoder_stack(agg, pemb, posp, enc, U, nhead):
    S, D = agg.shape
    L = enc['wqkv'].shape[0]
    kernel = _make_encoder_stack_kernel(S, U, D, nhead)

    def const_spec(a):
        nd = a.ndim
        return pl.BlockSpec(a.shape, lambda l, _nd=nd: (0,) * _nd)

    def layer_spec(a):
        return pl.BlockSpec((None,) + tuple(a.shape[1:]), lambda l: (l, 0, 0))

    const_args = (agg, pemb, posp['w1'], posp['b1'], posp['w2'], posp['b2'])
    layer_args = (enc['wqkv'], enc['bqkv'], enc['wo'], enc['bo'],
                  enc['w1'], enc['b1'], enc['w2'], enc['b2'],
                  enc['g1'], enc['be1'], enc['g2'], enc['be2'])

    return pl.pallas_call(
        kernel,
        out_shape=jax.ShapeDtypeStruct((S, D), jnp.float32),
        grid=(L,),
        in_specs=[const_spec(a) for a in const_args] + [layer_spec(a) for a in layer_args],
        out_specs=pl.BlockSpec((S, D), lambda l: (0, 0)),
        compiler_params=pltpu.CompilerParams(
            dimension_semantics=("arbitrary",),
            vmem_limit_bytes=32 * 1024 * 1024),
    )(*const_args, *layer_args)


# ----------------------------------------------------------------------------------
# Kernel 2: fused delta MLP + final residual, row-tiled & parallel over gaussians
# (the first linear of the delta MLP is split into pos-embed and feature parts so no
#  concatenated input has to be materialized in HBM)
# ----------------------------------------------------------------------------------
def _delta_kernel(cemb_ref, rec_ref, w1p_ref, w1f_ref, b1_ref, w2_ref, b2_ref, o_ref):
    bf16 = jnp.bfloat16
    rec = rec_ref[...]
    h = (jnp.dot(cemb_ref[...].astype(bf16), w1p_ref[...], preferred_element_type=jnp.float32)
         + jnp.dot(rec.astype(bf16), w1f_ref[...], preferred_element_type=jnp.float32)
         + b1_ref[...])
    h = jnp.where(h >= 0.0, h, 0.01 * h)        # LeakyReLU(0.01); Dropout == identity (eval)
    delta = jnp.dot(h.astype(bf16), w2_ref[...],
                    preferred_element_type=jnp.float32) + b2_ref[...]
    o_ref[...] = rec + delta                    # fused final residual


def pallas_delta(cemb, rec, w1p, w1f, b1, w2, b2, row_tile):
    Np, CE = cemb.shape
    D = rec.shape[1]
    weights = (w1p, w1f, b1, w2, b2)
    return pl.pallas_call(
        _delta_kernel,
        out_shape=jax.ShapeDtypeStruct((Np, D), jnp.float32),
        grid=(Np // row_tile,),
        in_specs=[pl.BlockSpec((row_tile, CE), lambda i: (i, 0)),
                  pl.BlockSpec((row_tile, D), lambda i: (i, 0))]
                 + [pl.BlockSpec(w.shape, lambda i, _nd=w.ndim: (0,) * _nd) for w in weights],
        out_specs=pl.BlockSpec((row_tile, D), lambda i: (i, 0)),
        compiler_params=pltpu.CompilerParams(
            dimension_semantics=("parallel",),
            vmem_limit_bytes=32 * 1024 * 1024),
    )(cemb, rec, *weights)


# ----------------------------------------------------------------------------------
# parameter init (deterministic, synthetic) -> kernel-ready (stacked, padded, bf16)
# ----------------------------------------------------------------------------------
def init_params(key, args):
    D = args['d_model']
    FF = args['dim_feedforward']
    E = args['expand_to_dim']
    L = args['num_layers']
    pos_in = 6 * args['multi_res_dimension_in_transformer_pos_encode'] + 3
    delta_pos_in = 6 * args['multi_res_in_delta_network'] + 3
    pos_in_pad = _round_up(pos_in, 8)
    delta_pos_pad = _round_up(delta_pos_in, 8)

    keys = iter(jax.random.split(key, 16 + 8 * L))

    def lin(k, din, dout, scale=0.1):
        kw, kb = jax.random.split(k)
        w = jax.random.normal(kw, (din, dout), jnp.float32) * scale   # stored (in, out)
        b = jax.random.normal(kb, (1, dout), jnp.float32) * 0.01
        return w, b

    # positional-encoding MLP (matmul weights bf16 for the MXU, biases f32)
    pw1, pb1 = lin(next(keys), pos_in, D)
    pw2, pb2 = lin(next(keys), D, D)
    posp = {'w1': _pad_rows(pw1, pos_in_pad).astype(jnp.bfloat16), 'b1': pb1,
            'w2': pw2.astype(jnp.bfloat16), 'b2': pb2}

    # delta MLP: first linear acts on concat([pos_embed, features]); split weight rows
    dw1, db1 = lin(next(keys), delta_pos_in + D, E)
    dw2, db2 = lin(next(keys), E, E)
    delta = {'w1_pos': _pad_rows(dw1[:delta_pos_in], delta_pos_pad).astype(jnp.bfloat16),
             'w1_feat': dw1[delta_pos_in:].astype(jnp.bfloat16),
             'b1': db1, 'w2': dw2.astype(jnp.bfloat16), 'b2': db2}

    # transformer encoder layers, stacked along a leading "layer" axis
    wqkv, bqkv, wo, bo, w1, b1, w2, b2 = ([] for _ in range(8))
    for _ in range(L):
        ws, bs = [], []
        for _qkv in range(3):
            w, b = lin(next(keys), D, D)
            ws.append(w); bs.append(b)
        wqkv.append(jnp.concatenate(ws, axis=1))     # [D, 3D]
        bqkv.append(jnp.concatenate(bs, axis=1))     # [1, 3D]
        w, b = lin(next(keys), D, D);  wo.append(w); bo.append(b)
        w, b = lin(next(keys), D, FF); w1.append(w); b1.append(b)
        w, b = lin(next(keys), FF, D); w2.append(w); b2.append(b)
    enc = {'wqkv': jnp.stack(wqkv).astype(jnp.bfloat16), 'bqkv': jnp.stack(bqkv),
           'wo': jnp.stack(wo).astype(jnp.bfloat16),     'bo': jnp.stack(bo),
           'w1': jnp.stack(w1).astype(jnp.bfloat16),     'b1': jnp.stack(b1),
           'w2': jnp.stack(w2).astype(jnp.bfloat16),     'b2': jnp.stack(b2),
           'g1': jnp.ones((L, 1, D), jnp.float32), 'be1': jnp.zeros((L, 1, D), jnp.float32),
           'g2': jnp.ones((L, 1, D), jnp.float32), 'be2': jnp.zeros((L, 1, D), jnp.float32)}

    return {'posp': posp, 'delta': delta, 'enc': enc,
            'pos_in_pad': pos_in_pad, 'delta_pos_pad': delta_pos_pad}


# ----------------------------------------------------------------------------------
# forward pass of LocalTransformerOperations
# ----------------------------------------------------------------------------------
def local_transformer_forward(gaussian_centres, gaussian_features, params, args, sample_seed=0):
    D = args['d_model']
    assert args['expand_to_dim'] == D, "final residual requires expand_to_dim == d_model"
    nhead = args['nhead']
    voxel_size = args['voxel_size']
    m_pos = args['multi_res_dimension_in_transformer_pos_encode']
    m_delta = args['multi_res_in_delta_network']
    N = gaussian_centres.shape[0]

    # ---- host glue: voxelize -> unique -> inverse -> per-voxel 20% random sample ----
    # TODO(synk): torch.unique / random.sample are dynamic-shape host ops with no clean Pallas
    # equivalent; done here with *vectorized* numpy (no per-voxel Python loop), only index/mask
    # arrays go to the device.
    centres_np = np.asarray(gaussian_centres, dtype=np.float32)
    voxel_positions = np.round(centres_np / voxel_size) * voxel_size
    unique_rows, inverse = np.unique(voxel_positions, axis=0, return_inverse=True)
    inverse = np.asarray(inverse).reshape(-1).astype(np.int32)
    U = int(unique_rows.shape[0])
    S_pad = max(8, _round_up(U, 8))

    rng = np.random.default_rng(sample_seed)
    r = rng.random(N)
    order = np.lexsort((r, inverse))                       # group by voxel, random inside group
    counts = np.bincount(inverse, minlength=U)
    k_per = (counts * 0.2).astype(np.int64)                # int(0.2*len): groups with <5 keep 0 (matches reference)
    offsets = np.cumsum(counts) - counts
    ranks = np.arange(N) - np.repeat(offsets, counts)
    sel = np.zeros(N, dtype=np.float32)
    sel[order[ranks < np.repeat(k_per, counts)]] = 1.0

    feats = jnp.asarray(gaussian_features, jnp.float32)
    seg_ids = jnp.asarray(inverse)
    # O(N*D) masked segment-SUM (reference sums, not means) replaces the dense one-hot matmul
    aggregated = jax.ops.segment_sum(feats * jnp.asarray(sel)[:, None], seg_ids,
                                     num_segments=S_pad)                       # [S_pad, D]

    # ---- fused pos-MLP + transformer encoder stack (single pallas_call) ----
    unique_pad = jnp.zeros((S_pad, 3), jnp.float32).at[:U].set(jnp.asarray(unique_rows))
    pemb = _pad_cols(fourier_embed(unique_pad, m_pos), params['pos_in_pad'])   # [S_pad, Pin_pad]
    x = pallas_encoder_stack(aggregated, pemb, params['posp'], params['enc'], U, nhead)

    # ---- recast features back to per-gaussian ordering (XLA gather) ----
    recasted = jnp.take(x[:U], seg_ids, axis=0)                                # [N, D]

    # ---- fused delta MLP + final residual, row-tiled over gaussians ----
    row_tile = min(256, _round_up(N, 8))
    N_pad = _round_up(N, row_tile)
    cemb = fourier_embed(jnp.asarray(centres_np), m_delta)
    cemb = _pad_rows(_pad_cols(cemb, params['delta_pos_pad']), N_pad)          # [N_pad, CE_pad]
    rec_pad = _pad_rows(recasted, N_pad)                                       # [N_pad, D]
    dp = params['delta']
    out = pallas_delta(cemb, rec_pad, dp['w1_pos'], dp['w1_feat'], dp['b1'],
                       dp['w2'], dp['b2'], row_tile)
    return out[:N]                                                             # [N, D]


# ----------------------------------------------------------------------------------
if __name__ == "__main__":
    transformer_args = {
        'd_model': 32,
        'nhead': 2,
        'dim_feedforward': 64,
        'dropout': 0.1,
        'num_layers': 2,
        'voxel_size': 1.0,
        'multi_res_in_delta_network': 4,
        'multi_res_dimension_in_transformer_pos_encode': 4,
        'expand_to_dim': 32,          # must equal d_model for the final residual add
        'use_learnable': True,
    }

    key = jax.random.PRNGKey(0)
    k_params, k_centres, k_feats = jax.random.split(key, 3)

    N = 128
    gaussian_centres = jax.random.uniform(k_centres, (N, 3), jnp.float32, minval=-1.2, maxval=1.2)
    gaussian_features = jax.random.normal(k_feats, (N, transformer_args['d_model']), jnp.float32) * 0.5

    params = init_params(k_params, transformer_args)

    out = local_transformer_forward(gaussian_centres, gaussian_features, params, transformer_args)
    out = jax.block_until_ready(out)

    assert out.shape == (N, transformer_args['d_model']), out.shape
    assert bool(jnp.all(jnp.isfinite(out)))
    print("KERNEL_OK")
</pallas_src>

<mosaic_0001>
module attributes {stable_mosaic.version = 11 : i64} {
  func.func @kernel(%arg0: i32, %arg1: memref<32x32xf32, #tpu.memory_space<vmem>>, %arg2: memref<32x32xf32, #tpu.memory_space<vmem>>, %arg3: memref<32x32xbf16, #tpu.memory_space<vmem>>, %arg4: memref<1x32xf32, #tpu.memory_space<vmem>>, %arg5: memref<32x32xbf16, #tpu.memory_space<vmem>>, %arg6: memref<1x32xf32, #tpu.memory_space<vmem>>, %arg7: memref<1x32x96xbf16, #tpu.memory_space<vmem>>, %arg8: memref<1x1x96xf32, #tpu.memory_space<vmem>>, %arg9: memref<1x32x32xbf16, #tpu.memory_space<vmem>>, %arg10: memref<1x1x32xf32, #tpu.memory_space<vmem>>, %arg11: memref<1x32x64xbf16, #tpu.memory_space<vmem>>, %arg12: memref<1x1x64xf32, #tpu.memory_space<vmem>>, %arg13: memref<1x64x32xbf16, #tpu.memory_space<vmem>>, %arg14: memref<1x1x32xf32, #tpu.memory_space<vmem>>, %arg15: memref<1x1x32xf32, #tpu.memory_space<vmem>>, %arg16: memref<1x1x32xf32, #tpu.memory_space<vmem>>, %arg17: memref<1x1x32xf32, #tpu.memory_space<vmem>>, %arg18: memref<1x1x32xf32, #tpu.memory_space<vmem>>, %arg19: memref<32x32xf32, #tpu.memory_space<vmem>>) attributes {dimension_semantics = [#tpu.dimension_semantics<arbitrary>], iteration_bounds = array<i64: 2>, scalar_prefetch = 0 : i64, scratch_operands = 0 : i64, tpu.core_type = #tpu.core_type<tc>, window_params = [{pipeline_mode = #tpu.pipeline_mode<synchronous>, transform_indices = @transform_0, window_bounds = array<i64: 32, 32>}, {pipeline_mode = #tpu.pipeline_mode<synchronous>, transform_indices = @transform_1, window_bounds = array<i64: 32, 32>}, {pipeline_mode = #tpu.pipeline_mode<synchronous>, transform_indices = @transform_2, window_bounds = array<i64: 32, 32>}, {pipeline_mode = #tpu.pipeline_mode<synchronous>, transform_indices = @transform_3, window_bounds = array<i64: 1, 32>}, {pipeline_mode = #tpu.pipeline_mode<synchronous>, transform_indices = @transform_4, window_bounds = array<i64: 32, 32>}, {pipeline_mode = #tpu.pipeline_mode<synchronous>, transform_indices = @transform_5, window_bounds = array<i64: 1, 32>}, {transform_indices = @transform_6, window_bounds = array<i64: 1, 32, 96>}, {transform_indices = @transform_7, window_bounds = array<i64: 1, 1, 96>}, {transform_indices = @transform_8, window_bounds = array<i64: 1, 32, 32>}, {transform_indices = @transform_9, window_bounds = array<i64: 1, 1, 32>}, {transform_indices = @transform_10, window_bounds = array<i64: 1, 32, 64>}, {transform_indices = @transform_11, window_bounds = array<i64: 1, 1, 64>}, {transform_indices = @transform_12, window_bounds = array<i64: 1, 64, 32>}, {transform_indices = @transform_13, window_bounds = array<i64: 1, 1, 32>}, {transform_indices = @transform_14, window_bounds = array<i64: 1, 1, 32>}, {transform_indices = @transform_15, window_bounds = array<i64: 1, 1, 32>}, {transform_indices = @transform_16, window_bounds = array<i64: 1, 1, 32>}, {transform_indices = @transform_17, window_bounds = array<i64: 1, 1, 32>}, {pipeline_mode = #tpu.pipeline_mode<synchronous>, transform_indices = @transform_18, window_bounds = array<i64: 32, 32>}]} {
    %c0_i32 = arith.constant 0 : i32
    %0 = arith.cmpi eq, %arg0, %c0_i32 : i32
    %1 = arith.extui %0 : i1 to i32
    %c0_i32_0 = arith.constant 0 : i32
    %2 = arith.cmpi ne, %1, %c0_i32_0 : i32
    scf.if %2 {
      %c0_66 = arith.constant 0 : index
      %c0_67 = arith.constant 0 : index
      %145 = vector.load %arg2[%c0_66, %c0_67] : memref<32x32xf32, #tpu.memory_space<vmem>>, vector<32x32xf32>
      %146 = arith.truncf %145 : vector<32x32xf32> to vector<32x32xbf16>
      %c0_68 = arith.constant 0 : index
      %c0_69 = arith.constant 0 : index
      %147 = vector.load %arg3[%c0_68, %c0_69] : memref<32x32xbf16, #tpu.memory_space<vmem>>, vector<32x32xbf16>
      %cst_70 = arith.constant dense<0.000000e+00> : vector<32x32xf32>
      %148 = tpu.matmul %146, %147, %cst_70 {dimension_numbers = #tpu.dot_dimension_numbers<[1], [0], [0], [1], [0, 0, 1, 1], [], []>} : vector<32x32xbf16>, vector<32x32xbf16>, vector<32x32xf32> -> vector<32x32xf32>
      %c0_71 = arith.constant 0 : index
      %c0_72 = arith.constant 0 : index
      %149 = vector.load %arg4[%c0_71, %c0_72] : memref<1x32xf32, #tpu.memory_space<vmem>>, vector<1x32xf32>
      %150 = vector.broadcast %149 : vector<1x32xf32> to vector<32x32xf32>
      %151 = arith.addf %148, %150 : vector<32x32xf32>
      %cst_73 = arith.constant 0.000000e+00 : f32
      %152 = vector.broadcast %cst_73 : f32 to vector<32x32xf32>
      %153 = arith.cmpf oge, %151, %152 : vector<32x32xf32>
      %cst_74 = arith.constant 0.00999999977 : f32
      %154 = vector.broadcast %cst_74 : f32 to vector<32x32xf32>
      %155 = arith.mulf %154, %151 : vector<32x32xf32>
      %156 = arith.select %153, %151, %155 : vector<32x32xi1>, vector<32x32xf32>
      %157 = arith.truncf %156 : vector<32x32xf32> to vector<32x32xbf16>
      %c0_75 = arith.constant 0 : index
      %c0_76 = arith.constant 0 : index
      %158 = vector.load %arg5[%c0_75, %c0_76] : memref<32x32xbf16, #tpu.memory_space<vmem>>, vector<32x32xbf16>
      %cst_77 = arith.constant dense<0.000000e+00> : vector<32x32xf32>
      %159 = tpu.matmul %157, %158, %cst_77 {dimension_numbers = #tpu.dot_dimension_numbers<[1], [0], [0], [1], [0, 0, 1, 1], [], []>} : vector<32x32xbf16>, vector<32x32xbf16>, vector<32x32xf32> -> vector<32x32xf32>
      %c0_78 = arith.constant 0 : index
      %c0_79 = arith.constant 0 : index
      %160 = vector.load %arg6[%c0_78, %c0_79] : memref<1x32xf32, #tpu.memory_space<vmem>>, vector<1x32xf32>
      %161 = vector.broadcast %160 : vector<1x32xf32> to vector<32x32xf32>
      %162 = arith.addf %159, %161 : vector<32x32xf32>
      %c0_80 = arith.constant 0 : index
      %c0_81 = arith.constant 0 : index
      %163 = vector.load %arg1[%c0_80, %c0_81] : memref<32x32xf32, #tpu.memory_space<vmem>>, vector<32x32xf32>
      %164 = arith.addf %163, %162 : vector<32x32xf32>
      %c0_82 = arith.constant 0 : index
      %c0_83 = arith.constant 0 : index
      %165 = vector.load %arg19[%c0_82, %c0_83] : memref<32x32xf32, #tpu.memory_space<vmem>>, vector<32x32xf32>
      tpu.vector_store %arg19[%c0_82, %c0_83], %164 {strides = array<i32>} : memref<32x32xf32, #tpu.memory_space<vmem>>, vector<32x32xf32>,
    } else {
    }
    %c0 = arith.constant 0 : index
    %c0_1 = arith.constant 0 : index
    %3 = vector.load %arg19[%c0, %c0_1] : memref<32x32xf32, #tpu.memory_space<vmem>>, vector<32x32xf32>
    %4 = arith.truncf %3 : vector<32x32xf32> to vector<32x32xbf16>
    %c0_2 = arith.constant 0 : index
    %c0_3 = arith.constant 0 : index
    %c0_4 = arith.constant 0 : index
    %5 = vector.load %arg7[%c0_2, %c0_3, %c0_4] : memref<1x32x96xbf16, #tpu.memory_space<vmem>>, vector<1x32x96xbf16>
    %6 = vector.shape_cast %5 : vector<1x32x96xbf16> to vector<32x96xbf16>
    %cst = arith.constant dense<0.000000e+00> : vector<32x96xf32>
    %7 = tpu.matmul %4, %6, %cst {dimension_numbers = #tpu.dot_dimension_numbers<[1], [0], [0], [1], [0, 0, 1, 1], [], []>} : vector<32x32xbf16>, vector<32x96xbf16>, vector<32x96xf32> -> vector<32x96xf32>
    %c0_5 = arith.constant 0 : index
    %c0_6 = arith.constant 0 : index
    %c0_7 = arith.constant 0 : index
    %8 = vector.load %arg8[%c0_5, %c0_6, %c0_7] : memref<1x1x96xf32, #tpu.memory_space<vmem>>, vector<1x1x96xf32>
    %9 = vector.shape_cast %8 : vector<1x1x96xf32> to vector<1x96xf32>
    %10 = vector.broadcast %9 : vector<1x96xf32> to vector<32x96xf32>
    %11 = arith.addf %7, %10 : vector<32x96xf32>
    %12 = tpu.iota {dimensions = array<i32: 1>} : vector<32x32xi32>
    %c27_i32 = arith.constant 27 : i32
    %13 = vector.broadcast %c27_i32 : i32 to vector<32x32xi32>
    %14 = arith.cmpi slt, %12, %13 : vector<32x32xi32>
    %15 = vector.extract_strided_slice %11 {offsets = [0, 0], sizes = [32, 16], strides = [1, 1]} : vector<32x96xf32> to vector<32x16xf32>
    %16 = arith.truncf %15 : vector<32x16xf32> to vector<32x16xbf16>
    %17 = vector.extract_strided_slice %11 {offsets = [0, 32], sizes = [32, 16], strides = [1, 1]} : vector<32x96xf32> to vector<32x16xf32>
    %18 = arith.truncf %17 : vector<32x16xf32> to vector<32x16xbf16>
    %19 = vector.extract_strided_slice %11 {offsets = [0, 64], sizes = [32, 16], strides = [1, 1]} : vector<32x96xf32> to vector<32x16xf32>
    %20 = arith.truncf %19 : vector<32x16xf32> to vector<32x16xbf16>
    %21 = tpu.transpose %18, [1, 0] : vector<32x16xbf16> -> vector<16x32xbf16>
    %cst_8 = arith.constant dense<0.000000e+00> : vector<32x32xf32>
    %22 = tpu.matmul %16, %21, %cst_8 {dimension_numbers = #tpu.dot_dimension_numbers<[1], [0], [0], [1], [0, 0, 1, 1], [], []>} : vector<32x16xbf16>, vector<16x32xbf16>, vector<32x32xf32> -> vector<32x32xf32>
    %cst_9 = arith.constant 2.500000e-01 : f32
    %23 = vector.broadcast %cst_9 : f32 to vector<32x32xf32>
    %24 = arith.mulf %22, %23 : vector<32x32xf32>
    %cst_10 = arith.constant -1.000000e+30 : f32
    %25 = vector.broadcast %cst_10 : f32 to vector<32x32xf32>
    %26 = arith.select %14, %24, %25 : vector<32x32xi1>, vector<32x32xf32>
    %cst_11 = arith.constant dense<0xFF800000> : vector<32xf32>
    %27 = vector.multi_reduction <maximumf>, %26, %cst_11 [1] : vector<32x32xf32> to vector<32xf32>
    %28 = vector.shape_cast %27 : vector<32xf32> to vector<32x1xf32>
    %29 = vector.broadcast %28 : vector<32x1xf32> to vector<32x32xf32>
    %30 = arith.subf %26, %29 : vector<32x32xf32>
    %31 = math.exp %30 : vector<32x32xf32>
    %cst_12 = arith.constant dense<0.000000e+00> : vector<32xf32>
    %32 = vector.multi_reduction <add>, %31, %cst_12 [1] : vector<32x32xf32> to vector<32xf32>
    %33 = vector.shape_cast %32 : vector<32xf32> to vector<32x1xf32>
    %34 = tpu.reciprocal %33 {approx = true} : vector<32x1xf32> -> vector<32x1xf32>
    %35 = vector.broadcast %34 : vector<32x1xf32> to vector<32x32xf32>
    %36 = arith.mulf %31, %35 : vector<32x32xf32>
    %37 = arith.truncf %36 : vector<32x32xf32> to vector<32x32xbf16>
    %cst_13 = arith.constant dense<0.000000e+00> : vector<32x16xf32>
    %38 = tpu.matmul %37, %20, %cst_13 {dimension_numbers = #tpu.dot_dimension_numbers<[1], [0], [0], [1], [0, 0, 1, 1], [], []>} : vector<32x32xbf16>, vector<32x16xbf16>, vector<32x16xf32> -> vector<32x16xf32>
    %39 = vector.extract_strided_slice %11 {offsets = [0, 16], sizes = [32, 16], strides = [1, 1]} : vector<32x96xf32> to vector<32x16xf32>
    %40 = arith.truncf %39 : vector<32x16xf32> to vector<32x16xbf16>
    %41 = vector.extract_strided_slice %11 {offsets = [0, 48], sizes = [32, 16], strides = [1, 1]} : vector<32x96xf32> to vector<32x16xf32>
    %42 = arith.truncf %41 : vector<32x16xf32> to vector<32x16xbf16>
    %43 = vector.extract_strided_slice %11 {offsets = [0, 80], sizes = [32, 16], strides = [1, 1]} : vector<32x96xf32> to vector<32x16xf32>
    %44 = arith.truncf %43 : vector<32x16xf32> to vector<32x16xbf16>
    %45 = tpu.transpose %42, [1, 0] : vector<32x16xbf16> -> vector<16x32xbf16>
    %cst_14 = arith.constant dense<0.000000e+00> : vector<32x32xf32>
    %46 = tpu.matmul %40, %45, %cst_14 {dimension_numbers = #tpu.dot_dimension_numbers<[1], [0], [0], [1], [0, 0, 1, 1], [], []>} : vector<32x16xbf16>, vector<16x32xbf16>, vector<32x32xf32> -> vector<32x32xf32>
    %cst_15 = arith.constant 2.500000e-01 : f32
    %47 = vector.broadcast %cst_15 : f32 to vector<32x32xf32>
    %48 = arith.mulf %46, %47 : vector<32x32xf32>
    %cst_16 = arith.constant -1.000000e+30 : f32
    %49 = vector.broadcast %cst_16 : f32 to vector<32x32xf32>
    %50 = arith.select %14, %48, %49 : vector<32x32xi1>, vector<32x32xf32>
    %cst_17 = arith.constant dense<0xFF800000> : vector<32xf32>
    %51 = vector.multi_reduction <maximumf>, %50, %cst_17 [1] : vector<32x32xf32> to vector<32xf32>
    %52 = vector.shape_cast %51 : vector<32xf32> to vector<32x1xf32>
    %53 = vector.broadcast %52 : vector<32x1xf32> to vector<32x32xf32>
    %54 = arith.subf %50, %53 : vector<32x32xf32>
    %55 = math.exp %54 : vector<32x32xf32>
    %cst_18 = arith.constant dense<0.000000e+00> : vector<32xf32>
    %56 = vector.multi_reduction <add>, %55, %cst_18 [1] : vector<32x32xf32> to vector<32xf32>
    %57 = vector.shape_cast %56 : vector<32xf32> to vector<32x1xf32>
    %58 = tpu.reciprocal %57 {approx = true} : vector<32x1xf32> -> vector<32x1xf32>
    %59 = vector.broadcast %58 : vector<32x1xf32> to vector<32x32xf32>
    %60 = arith.mulf %55, %59 : vector<32x32xf32>
    %61 = arith.truncf %60 : vector<32x32xf32> to vector<32x32xbf16>
    %cst_19 = arith.constant dense<0.000000e+00> : vector<32x16xf32>
    %62 = tpu.matmul %61, %44, %cst_19 {dimension_numbers = #tpu.dot_dimension_numbers<[1], [0], [0], [1], [0, 0, 1, 1], [], []>} : vector<32x32xbf16>, vector<32x16xbf16>, vector<32x16xf32> -> vector<32x16xf32>
    %63 = tpu.concatenate %38, %62 in 1 : vector<32x16xf32>, vector<32x16xf32> -> vector<32x32xf32>
    %64 = arith.truncf %63 : vector<32x32xf32> to vector<32x32xbf16>
    %c0_20 = arith.constant 0 : index
    %c0_21 = arith.constant 0 : index
    %c0_22 = arith.constant 0 : index
    %65 = vector.load %arg9[%c0_20, %c0_21, %c0_22] : memref<1x32x32xbf16, #tpu.memory_space<vmem>>, vector<1x32x32xbf16>
    %66 = vector.shape_cast %65 : vector<1x32x32xbf16> to vector<32x32xbf16>
    %cst_23 = arith.constant dense<0.000000e+00> : vector<32x32xf32>
    %67 = tpu.matmul %64, %66, %cst_23 {dimension_numbers = #tpu.dot_dimension_numbers<[1], [0], [0], [1], [0, 0, 1, 1], [], []>} : vector<32x32xbf16>, vector<32x32xbf16>, vector<32x32xf32> -> vector<32x32xf32>
    %c0_24 = arith.constant 0 : index
    %c0_25 = arith.constant 0 : index
    %c0_26 = arith.constant 0 : index
    %68 = vector.load %arg10[%c0_24, %c0_25, %c0_26] : memref<1x1x32xf32, #tpu.memory_space<vmem>>, vector<1x1x32xf32>
    %69 = vector.shape_cast %68 : vector<1x1x32xf32> to vector<1x32xf32>
    %70 = vector.broadcast %69 : vector<1x32xf32> to vector<32x32xf32>
    %71 = arith.addf %67, %70 : vector<32x32xf32>
    %72 = arith.addf %3, %71 : vector<32x32xf32>
    %cst_27 = arith.constant dense<0.000000e+00> : vector<32xf32>
    %73 = vector.multi_reduction <add>, %72, %cst_27 [1] : vector<32x32xf32> to vector<32xf32>
    %74 = vector.shape_cast %73 : vector<32xf32> to vector<32x1xf32>
    %cst_28 = arith.constant 3.200000e+01 : f32
    %75 = vector.broadcast %cst_28 : f32 to vector<32x1xf32>
    %76 = arith.divf %74, %75 : vector<32x1xf32>
    %77 = vector.broadcast %76 : vector<32x1xf32> to vector<32x32xf32>
    %78 = arith.subf %72, %77 : vector<32x32xf32>
    %79 = arith.mulf %78, %78 : vector<32x32xf32>
    %cst_29 = arith.constant dense<0.000000e+00> : vector<32xf32>
    %80 = vector.multi_reduction <add>, %79, %cst_29 [1] : vector<32x32xf32> to vector<32xf32>
    %81 = vector.shape_cast %80 : vector<32xf32> to vector<32x1xf32>
    %cst_30 = arith.constant 3.200000e+01 : f32
    %82 = vector.broadcast %cst_30 : f32 to vector<32x1xf32>
    %83 = arith.divf %81, %82 : vector<32x1xf32>
    %84 = vector.broadcast %76 : vector<32x1xf32> to vector<32x32xf32>
    %85 = arith.subf %72, %84 : vector<32x32xf32>
    %cst_31 = arith.constant 9.99999974E-6 : f32
    %86 = vector.broadcast %cst_31 : f32 to vector<32x1xf32>
    %87 = arith.addf %83, %86 : vector<32x1xf32>
    %88 = math.rsqrt %87 : vector<32x1xf32>
    %89 = vector.broadcast %88 : vector<32x1xf32> to vector<32x32xf32>
    %90 = arith.mulf %85, %89 : vector<32x32xf32>
    %c0_32 = arith.constant 0 : index
    %c0_33 = arith.constant 0 : index
    %c0_34 = arith.constant 0 : index
    %91 = vector.load %arg15[%c0_32, %c0_33, %c0_34] : memref<1x1x32xf32, #tpu.memory_space<vmem>>, vector<1x1x32xf32>
    %92 = vector.shape_cast %91 : vector<1x1x32xf32> to vector<1x32xf32>
    %93 = vector.broadcast %92 : vector<1x32xf32> to vector<32x32xf32>
    %94 = arith.mulf %90, %93 : vector<32x32xf32>
    %c0_35 = arith.constant 0 : index
    %c0_36 = arith.constant 0 : index
    %c0_37 = arith.constant 0 : index
    %95 = vector.load %arg16[%c0_35, %c0_36, %c0_37] : memref<1x1x32xf32, #tpu.memory_space<vmem>>, vector<1x1x32xf32>
    %96 = vector.shape_cast %95 : vector<1x1x32xf32> to vector<1x32xf32>
    %97 = vector.broadcast %96 : vector<1x32xf32> to vector<32x32xf32>
    %98 = arith.addf %94, %97 : vector<32x32xf32>
    %99 = arith.truncf %98 : vector<32x32xf32> to vector<32x32xbf16>
    %c0_38 = arith.constant 0 : index
    %c0_39 = arith.constant 0 : index
    %c0_40 = arith.constant 0 : index
    %100 = vector.load %arg11[%c0_38, %c0_39, %c0_40] : memref<1x32x64xbf16, #tpu.memory_space<vmem>>, vector<1x32x64xbf16>
    %101 = vector.shape_cast %100 : vector<1x32x64xbf16> to vector<32x64xbf16>
    %cst_41 = arith.constant dense<0.000000e+00> : vector<32x64xf32>
    %102 = tpu.matmul %99, %101, %cst_41 {dimension_numbers = #tpu.dot_dimension_numbers<[1], [0], [0], [1], [0, 0, 1, 1], [], []>} : vector<32x32xbf16>, vector<32x64xbf16>, vector<32x64xf32> -> vector<32x64xf32>
    %c0_42 = arith.constant 0 : index
    %c0_43 = arith.constant 0 : index
    %c0_44 = arith.constant 0 : index
    %103 = vector.load %arg12[%c0_42, %c0_43, %c0_44] : memref<1x1x64xf32, #tpu.memory_space<vmem>>, vector<1x1x64xf32>
    %104 = vector.shape_cast %103 : vector<1x1x64xf32> to vector<1x64xf32>
    %105 = vector.broadcast %104 : vector<1x64xf32> to vector<32x64xf32>
    %106 = arith.addf %102, %105 : vector<32x64xf32>
    %cst_45 = arith.constant 0.000000e+00 : f32
    %107 = vector.broadcast %cst_45 : f32 to vector<32x64xf32>
    %108 = arith.maximumf %106, %107 : vector<32x64xf32>
    %109 = arith.truncf %108 : vector<32x64xf32> to vector<32x64xbf16>
    %c0_46 = arith.constant 0 : index
    %c0_47 = arith.constant 0 : index
    %c0_48 = arith.constant 0 : index
    %110 = vector.load %arg13[%c0_46, %c0_47, %c0_48] : memref<1x64x32xbf16, #tpu.memory_space<vmem>>, vector<1x64x32xbf16>
    %111 = vector.shape_cast %110 : vector<1x64x32xbf16> to vector<64x32xbf16>
    %cst_49 = arith.constant dense<0.000000e+00> : vector<32x32xf32>
    %112 = tpu.matmul %109, %111, %cst_49 {dimension_numbers = #tpu.dot_dimension_numbers<[1], [0], [0], [1], [0, 0, 1, 1], [], []>} : vector<32x64xbf16>, vector<64x32xbf16>, vector<32x32xf32> -> vector<32x32xf32>
    %c0_50 = arith.constant 0 : index
    %c0_51 = arith.constant 0 : index
    %c0_52 = arith.constant 0 : index
    %113 = vector.load %arg14[%c0_50, %c0_51, %c0_52] : memref<1x1x32xf32, #tpu.memory_space<vmem>>, vector<1x1x32xf32>
    %114 = vector.shape_cast %113 : vector<1x1x32xf32> to vector<1x32xf32>
    %115 = vector.broadcast %114 : vector<1x32xf32> to vector<32x32xf32>
    %116 = arith.addf %112, %115 : vector<32x32xf32>
    %117 = arith.addf %98, %116 : vector<32x32xf32>
    %cst_53 = arith.constant dense<0.000000e+00> : vector<32xf32>
    %118 = vector.multi_reduction <add>, %117, %cst_53 [1] : vector<32x32xf32> to vector<32xf32>
    %119 = vector.shape_cast %118 : vector<32xf32> to vector<32x1xf32>
    %cst_54 = arith.constant 3.200000e+01 : f32
    %120 = vector.broadcast %cst_54 : f32 to vector<32x1xf32>
    %121 = arith.divf %119, %120 : vector<32x1xf32>
    %122 = vector.broadcast %121 : vector<32x1xf32> to vector<32x32xf32>
    %123 = arith.subf %117, %122 : vector<32x32xf32>
    %124 = arith.mulf %123, %123 : vector<32x32xf32>
    %cst_55 = arith.constant dense<0.000000e+00> : vector<32xf32>
    %125 = vector.multi_reduction <add>, %124, %cst_55 [1] : vector<32x32xf32> to vector<32xf32>
    %126 = vector.shape_cast %125 : vector<32xf32> to vector<32x1xf32>
    %cst_56 = arith.constant 3.200000e+01 : f32
    %127 = vector.broadcast %cst_56 : f32 to vector<32x1xf32>
    %128 = arith.divf %126, %127 : vector<32x1xf32>
    %129 = vector.broadcast %121 : vector<32x1xf32> to vector<32x32xf32>
    %130 = arith.subf %117, %129 : vector<32x32xf32>
    %cst_57 = arith.constant 9.99999974E-6 : f32
    %131 = vector.broadcast %cst_57 : f32 to vector<32x1xf32>
    %132 = arith.addf %128, %131 : vector<32x1xf32>
    %133 = math.rsqrt %132 : vector<32x1xf32>
    %134 = vector.broadcast %133 : vector<32x1xf32> to vector<32x32xf32>
    %135 = arith.mulf %130, %134 : vector<32x32xf32>
    %c0_58 = arith.constant 0 : index
    %c0_59 = arith.constant 0 : index
    %c0_60 = arith.constant 0 : index
    %136 = vector.load %arg17[%c0_58, %c0_59, %c0_60] : memref<1x1x32xf32, #tpu.memory_space<vmem>>, vector<1x1x32xf32>
    %137 = vector.shape_cast %136 : vector<1x1x32xf32> to vector<1x32xf32>
    %138 = vector.broadcast %137 : vector<1x32xf32> to vector<32x32xf32>
    %139 = arith.mulf %135, %138 : vector<32x32xf32>
    %c0_61 = arith.constant 0 : index
    %c0_62 = arith.constant 0 : index
    %c0_63 = arith.constant 0 : index
    %140 = vector.load %arg18[%c0_61, %c0_62, %c0_63] : memref<1x1x32xf32, #tpu.memory_space<vmem>>, vector<1x1x32xf32>
    %141 = vector.shape_cast %140 : vector<1x1x32xf32> to vector<1x32xf32>
    %142 = vector.broadcast %141 : vector<1x32xf32> to vector<32x32xf32>
    %143 = arith.addf %139, %142 : vector<32x32xf32>
    %c0_64 = arith.constant 0 : index
    %c0_65 = arith.constant 0 : index
    %144 = vector.load %arg19[%c0_64, %c0_65] : memref<32x32xf32, #tpu.memory_space<vmem>>, vector<32x32xf32>
    tpu.vector_store %arg19[%c0_64, %c0_65], %143 {strides = array<i32>} : memref<32x32xf32, #tpu.memory_space<vmem>>, vector<32x32xf32>,
    return
  }
  func.func @transform_0(%arg0: i32) -> (i32, i32) {
    %c0_i32 = arith.constant 0 : i32
    %c0_i32_0 = arith.constant 0 : i32
    %c0_i32_1 = arith.constant 0 : i32
    return %c0_i32, %c0_i32_0 : i32, i32
  }
  func.func @transform_1(%arg0: i32) -> (i32, i32) {
    %c0_i32 = arith.constant 0 : i32
    %c0_i32_0 = arith.constant 0 : i32
    %c0_i32_1 = arith.constant 0 : i32
    return %c0_i32, %c0_i32_0 : i32, i32
  }
  func.func @transform_2(%arg0: i32) -> (i32, i32) {
    %c0_i32 = arith.constant 0 : i32
    %c0_i32_0 = arith.constant 0 : i32
    %c0_i32_1 = arith.constant 0 : i32
    return %c0_i32, %c0_i32_0 : i32, i32
  }
  func.func @transform_3(%arg0: i32) -> (i32, i32) {
    %c0_i32 = arith.constant 0 : i32
    %c0_i32_0 = arith.constant 0 : i32
    %c0_i32_1 = arith.constant 0 : i32
    return %c0_i32, %c0_i32_0 : i32, i32
  }
  func.func @transform_4(%arg0: i32) -> (i32, i32) {
    %c0_i32 = arith.constant 0 : i32
    %c0_i32_0 = arith.constant 0 : i32
    %c0_i32_1 = arith.constant 0 : i32
    return %c0_i32, %c0_i32_0 : i32, i32
  }
  func.func @transform_5(%arg0: i32) -> (i32, i32) {
    %c0_i32 = arith.constant 0 : i32
    %c0_i32_0 = arith.constant 0 : i32
    %c0_i32_1 = arith.constant 0 : i32
    return %c0_i32, %c0_i32_0 : i32, i32
  }
  func.func @transform_6(%arg0: i32) -> (i32, i32, i32) {
    %c0_i32 = arith.constant 0 : i32
    %c0_i32_0 = arith.constant 0 : i32
    %c0_i32_1 = arith.constant 0 : i32
    return %arg0, %c0_i32, %c0_i32_0 : i32, i32, i32
  }
  func.func @transform_7(%arg0: i32) -> (i32, i32, i32) {
    %c0_i32 = arith.constant 0 : i32
    %c0_i32_0 = arith.constant 0 : i32
    %c0_i32_1 = arith.constant 0 : i32
    return %arg0, %c0_i32, %c0_i32_0 : i32, i32, i32
  }
  func.func @transform_8(%arg0: i32) -> (i32, i32, i32) {
    %c0_i32 = arith.constant 0 : i32
    %c0_i32_0 = arith.constant 0 : i32
    %c0_i32_1 = arith.constant 0 : i32
    return %arg0, %c0_i32, %c0_i32_0 : i32, i32, i32
  }
  func.func @transform_9(%arg0: i32) -> (i32, i32, i32) {
    %c0_i32 = arith.constant 0 : i32
    %c0_i32_0 = arith.constant 0 : i32
    %c0_i32_1 = arith.constant 0 : i32
    return %arg0, %c0_i32, %c0_i32_0 : i32, i32, i32
  }
  func.func @transform_10(%arg0: i32) -> (i32, i32, i32) {
    %c0_i32 = arith.constant 0 : i32
    %c0_i32_0 = arith.constant 0 : i32
    %c0_i32_1 = arith.constant 0 : i32
    return %arg0, %c0_i32, %c0_i32_0 : i32, i32, i32
  }
  func.func @transform_11(%arg0: i32) -> (i32, i32, i32) {
    %c0_i32 = arith.constant 0 : i32
    %c0_i32_0 = arith.constant 0 : i32
    %c0_i32_1 = arith.constant 0 : i32
    return %arg0, %c0_i32, %c0_i32_0 : i32, i32, i32
  }
  func.func @transform_12(%arg0: i32) -> (i32, i32, i32) {
    %c0_i32 = arith.constant 0 : i32
    %c0_i32_0 = arith.constant 0 : i32
    %c0_i32_1 = arith.constant 0 : i32
    return %arg0, %c0_i32, %c0_i32_0 : i32, i32, i32
  }
  func.func @transform_13(%arg0: i32) -> (i32, i32, i32) {
    %c0_i32 = arith.constant 0 : i32
    %c0_i32_0 = arith.constant 0 : i32
    %c0_i32_1 = arith.constant 0 : i32
    return %arg0, %c0_i32, %c0_i32_0 : i32, i32, i32
  }
  func.func @transform_14(%arg0: i32) -> (i32, i32, i32) {
    %c0_i32 = arith.constant 0 : i32
    %c0_i32_0 = arith.constant 0 : i32
    %c0_i32_1 = arith.constant 0 : i32
    return %arg0, %c0_i32, %c0_i32_0 : i32, i32, i32
  }
  func.func @transform_15(%arg0: i32) -> (i32, i32, i32) {
    %c0_i32 = arith.constant 0 : i32
    %c0_i32_0 = arith.constant 0 : i32
    %c0_i32_1 = arith.constant 0 : i32
    return %arg0, %c0_i32, %c0_i32_0 : i32, i32, i32
  }
  func.func @transform_16(%arg0: i32) -> (i32, i32, i32) {
    %c0_i32 = arith.constant 0 : i32
    %c0_i32_0 = arith.constant 0 : i32
    %c0_i32_1 = arith.constant 0 : i32
    return %arg0, %c0_i32, %c0_i32_0 : i32, i32, i32
  }
  func.func @transform_17(%arg0: i32) -> (i32, i32, i32) {
    %c0_i32 = arith.constant 0 : i32
    %c0_i32_0 = arith.constant 0 : i32
    %c0_i32_1 = arith.constant 0 : i32
    return %arg0, %c0_i32, %c0_i32_0 : i32, i32, i32
  }
  func.func @transform_18(%arg0: i32) -> (i32, i32) {
    %c0_i32 = arith.constant 0 : i32
    %c0_i32_0 = arith.constant 0 : i32
    %c0_i32_1 = arith.constant 0 : i32
    return %c0_i32, %c0_i32_0 : i32, i32
  }
}

</mosaic_0001>

<bundles_post_ra>
// kernel: tpu_custom_call.1
= control target key start
LH: loop header
LB: loop body
LE: loop exit
PB: predicated region body
PF: predicated region fallthrough
CT: control target
= control target key end

     0   :  { %s3340_s0 = inlined_call_operand.vmem [shape: f32[32,32], index: 0, kind: input, shape index: {}]   ;;  %s3341_s1 = inlined_call_operand.vmem [shape: f32[32,32], index: 1, kind: input, shape index: {}]   ;;  %s3342_s2 = inlined_call_operand.hbm [shape: bf16[32,32], index: 2, kind: input, shape index: {}]   ;;  %s3343_s3 = inlined_call_operand.vmem [shape: f32[1,32], index: 3, kind: input, shape index: {}]   ;;  %s3344_s4 = inlined_call_operand.hbm [shape: bf16[32,32], index: 4, kind: input, shape index: {}]   ;;  %s3345_s5 = inlined_call_operand.hbm [shape: f32[1,32], index: 5, kind: input, shape index: {}]   ;;  %s3346_s6 = inlined_call_operand.vmem [shape: bf16[2,32,96], index: 6, kind: input, shape index: {}]   ;;  %s3347_s7 = inlined_call_operand.vmem [shape: f32[2,1,96], index: 7, kind: input, shape index: {}]   ;;  %s3348_s8 = inlined_call_operand.hbm [shape: bf16[2,32,32], index: 8, kind: input, shape index: {}]   ;;  %s3349_s9 = inlined_call_operand.vmem [shape: f32[2,1,32], index: 9, kind: input, shape index: {}]   ;;  %s3350_s10 = inlined_call_operand.hbm [shape: bf16[2,32,64], index: 10, kind: input, shape index: {}]   ;;  %s3351_s11 = inlined_call_operand.vmem [shape: f32[2,1,64], index: 11, kind: input, shape index: {}]   ;;  %s3352_s12 = inlined_call_operand.vmem [shape: bf16[2,64,32], index: 12, kind: input, shape index: {}]   ;;  %s3353_s13 = inlined_call_operand.vmem [shape: f32[2,1,32], index: 13, kind: input, shape index: {}]   ;;  %s3354_s14 = inlined_call_operand.vmem [shape: f32[2,1,32], index: 14, kind: input, shape index: {}]   ;;  %s3355_s15 = inlined_call_operand.vmem [shape: f32[2,1,32], index: 15, kind: input, shape index: {}]   ;;  %s3356_s16 = inlined_call_operand.vmem [shape: f32[2,1,32], index: 16, kind: input, shape index: {}]   ;;  %s3357_s17 = inlined_call_operand.vmem [shape: f32[2,1,32], index: 17, kind: input, shape index: {}]   ;;  %s3358_s18 = inlined_call_operand.hbm [shape: f32[32,32], index: 18, kind: output, shape index: {}]  }
   0x1   :  { %3375 = sst [smem:[#allocation19_spill]] %s3340_s0 }
   0x2   :  { %3376 = sst [smem:[#allocation20_spill]] %s3341_s1 }
   0x3   :  { %3377 = sst [smem:[#allocation21_spill]] %s3342_s2 }
   0x4   :  { %3378 = sst [smem:[#allocation22_spill]] %s3343_s3 }
   0x5   :  { %3379 = sst [smem:[#allocation23_spill]] %s3344_s4 }
   0x6   :  { %3380 = sst [smem:[#allocation24_spill]] %s3346_s6 }
   0x7   :  { %3381 = sst [smem:[#allocation25_spill]] %s3347_s7 }
   0x8   :  { %3382 = sst [smem:[#allocation26_spill]] %s3348_s8 }
   0x9   :  { %3383 = sst [smem:[#allocation27_spill]] %s3349_s9 }
   0xa   :  { %3384 = sst [smem:[#allocation28_spill]] %s3351_s11 }
   0xb   :  { %3385 = sst [smem:[#allocation29_spill]] %s3352_s12 }
   0xc   :  { %3386 = sst [smem:[#allocation30_spill]] %s3353_s13 }
   0xd   :  { %3387 = sst [smem:[#allocation31_spill]] %s3354_s14 }
   0xe   :  { %3388 = sst [smem:[#allocation32_spill]] %s3355_s15 }
   0xf   :  { %3389 = sst [smem:[#allocation33_spill]] %s3356_s16 }
  0x10   :  { %3390 = sst [smem:[#allocation34_spill]] %s3357_s17 }
  0x11   :  { %3391 = sst [smem:[#allocation35_spill]] %s3358_s18 }
  0x12   :  { %23 = vsyncpa [#allocation3], 0 }
  0x13   :  { %24 = vsyncpa [#allocation6], 0 }
  0x14   :  { %25 = vsyncpa [#allocation9], 0 }
  0x15   :  { %27 = vsyncpa [#allocation9 + $0x1], 0 }
  0x16   :  { %28 = vsyncpa [#allocation4], 0  ;;  %s2810_s27 = smov 0   ;;  %s2812_s28 = smov 0  }
  0x17   :  { %s2814_s29 = smov 0   ;;  %s2816_s30 = smov 0  }
  0x18 LB: > { %3392 = sst [smem:[#allocation16_spill]] %s2693_s29  ;;  %s2829_s0 = sadd.s32 4294967295, %s2697_s30   ;;  %s2697_s30 = sphi %s2816_s30, %s3443_s30   ;;  %s2693_s29 = sphi %s2814_s29, %s3445_s29   ;;  %s2689_s28 = sphi %s2812_s28, %s3447_s28   ;;  %s2685_s27 = sphi %s2810_s27, %s3446_s27  }
  0x19   : > { %p232_p0 = scmp.ne.s32.totalorder %s2689_s28, %s2685_s27  ;;  %p3363_p1 = scmp.eq.s32.totalorder %s2829_s0, 0 }
  0x1a   : > { %p2113_p2 = scmp.ge.s32.totalorder %s2697_s30, 1  ;;  %p498_p3 = scmp.lt.s32.totalorder %s2697_s30, 3 }
  0x1b   : > { %p2838_p5 = por %p3363_p1, %p232_p0  ;;  %s2699_s20 = smov [#allocation5]  }
  0x1c   : > { %p2842_p6 = pnand %p2113_p2, %p498_p3  ;;  %s532_s21 = sshll.u32 %s2699_s20, 4  ;;  %s533_s21 = int_to_ptr.vmem [resolvable:$true] %s532_s21 }
  0x1d   : > { %s3393_s19 = scalar_select %p2838_p5, 1, 0 }
  0x1e   : > { %s3394_s1 = scalar_select %p2842_p6, 1, 0 }
  0x1f   : > { %p2337_p7 = pneg %p2842_p6  ;;  %s2855_s2 = sadd.s32 1, %s2697_s30  }
  0x20   : > { %3396 = sst [smem:[#allocation17_spill]] %s2855_s2  ;;  %s219_s23 = sadd.s32 1, %s2693_s29 }
  0x21   : > { %p2850_p8 = pnand %p2337_p7, %p3363_p1  ;;  %s216_s24 = ssub.s32 %s2697_s30, %s2855_s2 }
  0x22   : > { %s3397_s4 = sld [smem:[#allocation23_spill]] }
  0x23   : > { %s3395_s22 = scalar_select %p2850_p8, 1, 0 }
  0x24   : > { %p2868_p10 = pneg %p2850_p8 }
  0x28   : > { %s2481_s27 = scalar_lea.hbm %s3397_s4, 256 }
  0x29   : > { %p2482_p9 = scmp.ne.s32.totalorder %s3397_s4, %s2481_s27  ;;  %p2488_p13 = scmp.lt.u32.totalorder %s2481_s27, %s3397_s4 }
  0x2b   : > { %p2484_p11 = pnand %p2868_p10, %p2482_p9 }
  0x2d   : > { %p2485_p12 = pneg %p2484_p11 }
  0x2f   : > { %p2490_p0 = pnand %p2488_p13, %p2485_p12 }
  0x31   : > { %2493 = shalt.err (!%p2490_p0)
}
  0x32   : > { %s2494_s25 = scalar_lea.vmem %s533_s21, 256  ;;  %p2502_p4 = scmp.lt.s32.totalorder %s533_s21, %s533_s21 }
  0x33   : > { %p2495_p2 = scmp.ne.s32.totalorder %s533_s21, %s2494_s25  ;;  %p2503_p1 = scmp.lt.s32.totalorder %s2494_s25, %s2494_s25 }
  0x35   : > { %p2497_p3 = pnand %p2495_p2, %p2868_p10  ;;  %p2504_p5 = por %p2503_p1, %p2502_p4 }
  0x37   : > { %p2498_p7 = pneg %p2497_p3 }
  0x39   : > { %p2505_p6 = pnand %p2504_p5, %p2498_p7 }
  0x3b   : > { %2508 = shalt.err (!%p2505_p6)
}
  0x3c   : > { %s2700_s3 = smov 64   ;;  %s2701_s16 = smov 4  }
  0x3d   : > { %2343 = dma.hbm_to_vmem [thread:$0]  (!%p2850_p8), %s3397_s4, 256, %s533_s21, [#allocation6], %s2700_s3, %s2700_s3, %s2701_s16  }
  0x3e   : > { %p217_p1 = scmp.eq.s32.totalorder %s216_s24, 0  ;;  %p226_p4 = scmp.ne.s32.totalorder %s2693_s29, %s2689_s28 }
  0x3f   : > { %p227_p5 = scmp.eq.s32.totalorder %s2697_s30, 0  ;;  %p2357_p6 = scmp.lt.s32.totalorder %s2697_s30, 2 }
  0x40   : > { %s2892_s26 = scalar_select %p217_p1, %s2693_s29, %s219_s23  }
  0x41   : > { %p228_p9 = por %p227_p5, %p226_p4  ;;  %s571_s27 = sand.u32 1, %s2697_s30  }
  0x42   : > { %3399 = sst [smem:[#allocation18_spill]] %s2892_s26  ;;  %s573_s25 = sand.u32 1, %s2693_s29  }
  0x43   : > { %s2896_s2 = sshll.u32 %s573_s25, 4  ;;  %s3368_s15 = sshll.u32 %s2697_s30, 8 }
  0x44   : > { %s3400_s8 = sld [smem:[#allocation26_spill]]  ;;  %s575_s21 = scalar_lea.vmem [#allocation8], %s2896_s2 }
  0x45   : > { %s582_s23 = sshll.u32 %s575_s21, 4  ;;  %p2907_p11 = pnand %p2357_p6, %p228_p9  ;;  %s2911_s23 = int_to_ptr.vmem [resolvable:$true] %s582_s23 }
  0x46   : > { %s2913_s17 = scalar_lea.sflag [#allocation9], %s571_s27 }
  0x47   : > { %s3401_s24 = scalar_select %p2907_p11, 1, 0 }
  0x48   : > { %p3372_p13 = pneg %p2907_p11 }
  0x4a   : > { %s2904_s12 = scalar_lea.hbm %s3400_s8, %s3368_s15  ;;  %s2514_s25 = scalar_lea.hbm %s3400_s8, 512 }
  0x4b   : > { %s2509_s18 = scalar_lea.hbm %s2904_s12, 256  ;;  %p2515_p3 = scmp.lt.u32.totalorder %s2904_s12, %s3400_s8 }
  0x4c   : > { %p2510_p12 = scmp.ne.s32.totalorder %s2904_s12, %s2509_s18  ;;  %p2516_p7 = scmp.lt.u32.totalorder %s2514_s25, %s2509_s18 }
  0x4d   : > { %p2518_p4 = scmp.lt.u32.totalorder %s2509_s18, %s2904_s12 }
  0x4e   : > { %p2512_p0 = pnand %p3372_p13, %p2510_p12  ;;  %p2517_p1 = por %p2516_p7, %p2515_p3 }
  0x50   : > { %p2513_p2 = pneg %p2512_p0  ;;  %p2519_p5 = por %p2518_p4, %p2517_p1 }
  0x52   : > { %p2520_p6 = pnand %p2519_p5, %p2513_p2 }
  0x54   : > { %2523 = shalt.err (!%p2520_p6)
}
  0x55   : > { %s2524_s27 = scalar_lea.vmem %s2911_s23, 256  ;;  %s2702_s13 = smov [#allocation8]  }
  0x56   : > { %p2525_p9 = scmp.ne.s32.totalorder %s2911_s23, %s2524_s27  ;;  %s2529_s14 = sshll.u32 %s2702_s13, 4  ;;  %s2530_s14 = int_to_ptr.vmem [resolvable:$false] %s2529_s14 }
  0x57   : > { %s2531_s15 = scalar_lea.vmem %s2530_s14, 512  ;;  %p2532_p8 = scmp.lt.s32.totalorder %s2911_s23, %s2530_s14 }
  0x58   : > { %p2527_p12 = pnand %p2525_p9, %p3372_p13  ;;  %p2533_p3 = scmp.lt.s32.totalorder %s2531_s15, %s2524_s27 }
  0x5a   : > { %p2528_p0 = pneg %p2527_p12  ;;  %p2534_p7 = por %p2533_p3, %p2532_p8 }
  0x5c   : > { %p2535_p1 = pnand %p2534_p7, %p2528_p0 }
  0x5e   : > { %2538 = shalt.err (!%p2535_p1)
}
  0x5f   : > { %2350 = dma.hbm_to_vmem [thread:$0]  (!%p2907_p11), %s2904_s12, 256, %s2911_s23, %s2913_s17, %s2700_s3, %s2700_s3, %s2701_s16  }
  0x60   : > { %s3402_s18 = sshll.u32 %s2697_s30, 8  ;;  %s602_s13 = scalar_lea.vmem [#allocation10], %s2896_s2 }
  0x61   : > { %s2949_s27 = scalar_lea.hbm %s3350_s10, %s3402_s18  ;;  %s609_s14 = sshll.u32 %s602_s13, 4  ;;  %s2973_s14 = int_to_ptr.vmem [resolvable:$true] %s609_s14 }
  0x62   : > { %s2703_s15 = smov [#allocation2]   ;;  %s3403_s29 = sld [smem:[#allocation21_spill]] }
  0x63   : > { %s516_s4 = sshll.u32 %s2703_s15, 4  ;;  %s517_s4 = int_to_ptr.vmem [resolvable:$true] %s516_s4 }
  0x68   : > { %s3404_s11 = smov %s3403_s29  ;;  %s2539_s9 = scalar_lea.hbm %s3403_s29, 256 }
  0x69   : > { %p2540_p8 = scmp.ne.s32.totalorder %s3404_s11, %s2539_s9  ;;  %p2546_p5 = scmp.lt.u32.totalorder %s2539_s9, %s3404_s11 }
  0x6b   : > { %p2542_p2 = pnand %p2540_p8, %p2868_p10 }
  0x6d   : > { %p2543_p4 = pneg %p2542_p2 }
  0x6f   : > { %p2548_p6 = pnand %p2546_p5, %p2543_p4 }
  0x71   : > { %2551 = shalt.err (!%p2548_p6)
}
  0x72   : > { %s2552_s2 = scalar_lea.vmem %s517_s4, 256  ;;  %p2560_p3 = scmp.lt.s32.totalorder %s517_s4, %s517_s4 }
  0x73   : > { %p2553_p9 = scmp.ne.s32.totalorder %s517_s4, %s2552_s2  ;;  %p2561_p7 = scmp.lt.s32.totalorder %s2552_s2, %s2552_s2 }
  0x75   : > { %p2555_p12 = pnand %p2553_p9, %p2868_p10  ;;  %p2562_p1 = por %p2561_p7, %p2560_p3 }
  0x77   : > { %p2556_p0 = pneg %p2555_p12 }
  0x79   : > { %p2563_p13 = pnand %p2562_p1, %p2556_p0 }
  0x7b   : > { %2566 = shalt.err (!%p2563_p13)
}
  0x7c   : > { %p3405_p8 = scmp.ne.s32.totalorder %s3395_s22, 0  ;;  %s2704_s8 = smov [#allocation7]  }
  0x7d   : > { %s546_s9 = sshll.u32 %s2704_s8, 4  ;;  %s2567_s23 = scalar_lea.hbm %s3345_s5, 16  ;;  %s547_s9 = int_to_ptr.vmem [resolvable:$true] %s546_s9 }
  0x7e   : > { %2340 = dma.hbm_to_vmem [thread:$0]  (!%p3405_p8), %s3404_s11, 256, %s517_s4, [#allocation3], %s2700_s3, %s2700_s3, %s2701_s16  }
  0x7f   : > { %p2568_p13 = scmp.ne.s32.totalorder %s3345_s5, %s2567_s23  ;;  %p2574_p5 = scmp.lt.u32.totalorder %s2567_s23, %s3345_s5 }
  0x81   : > { %p2570_p2 = pnand %p2568_p13, %p2868_p10 }
  0x83   : > { %p2571_p4 = pneg %p2570_p2 }
  0x85   : > { %p2576_p6 = pnand %p2574_p5, %p2571_p4 }
  0x87   : > { %2579 = shalt.err (!%p2576_p6)
}
  0x88   : > { %s2580_s4 = scalar_lea.vmem %s547_s9, 16  ;;  %s2587_s15 = scalar_lea.vmem %s547_s9, 32 }
  0x89   : > { %p2581_p9 = scmp.ne.s32.totalorder %s547_s9, %s2580_s4  ;;  %p2588_p3 = scmp.lt.s32.totalorder %s547_s9, %s547_s9 }
  0x8a   : > { %p2589_p7 = scmp.lt.s32.totalorder %s2587_s15, %s2580_s4 }
  0x8b   : > { %p2583_p12 = pnand %p2581_p9, %p2868_p10 }
  0x8c   : > { %p2590_p1 = por %p2589_p7, %p2588_p3 }
  0x8d   : > { %p2584_p0 = pneg %p2583_p12 }
  0x8f   : > { %p2591_p11 = pnand %p2590_p1, %p2584_p0 }
  0x91   : > { %2594 = shalt.err (!%p2591_p11)
}
  0x92   : > { %2346 = dma.hbm_to_vmem [thread:$0]  (!%p3405_p8), %s3345_s5, 16, %s547_s9, [#allocation6]  }
  0x93   : > { %s2595_s20 = scalar_lea.hbm %s2949_s27, 256  ;;  %p3406_p13 = scmp.ne.s32.totalorder %s3401_s24, 0 }
  0x94   : > { %p2596_p10 = scmp.ne.s32.totalorder %s2949_s27, %s2595_s20  ;;  %s2600_s7 = scalar_lea.hbm %s3350_s10, 512 }
  0x95   : > { %p3407_p2 = pneg %p3406_p13  ;;  %p2601_p11 = scmp.lt.u32.totalorder %s2949_s27, %s3350_s10 }
  0x96   : > { %p2602_p6 = scmp.lt.u32.totalorder %s2600_s7, %s2595_s20  ;;  %p2604_p12 = scmp.lt.u32.totalorder %s2595_s20, %s2949_s27 }
  0x97   : > { %p2598_p4 = pnand %p2596_p10, %p3407_p2 }
  0x98   : > { %p2603_p9 = por %p2602_p6, %p2601_p11 }
  0x99   : > { %p2599_p5 = pneg %p2598_p4 }
  0x9a   : > { %p2605_p0 = por %p2604_p12, %p2603_p9 }
  0x9c   : > { %p2606_p3 = pnand %p2605_p0, %p2599_p5 }
  0x9e   : > { %2609 = shalt.err (!%p2606_p3)
}
  0x9f   : > { %s2610_s9 = scalar_lea.vmem %s2973_s14, 256  ;;  %p3408_p7 = pmov %p3407_p2 }
  0xa0   : > { %p2611_p8 = scmp.ne.s32.totalorder %s2973_s14, %s2610_s9  ;;  %s2705_s29 = smov [#allocation10]  }
  0xa1   : > { %s2615_s26 = sshll.u32 %s2705_s29, 4  ;;  %s2616_s26 = int_to_ptr.vmem [resolvable:$false] %s2615_s26 }
  0xa2   : > { %p2613_p1 = pnand %p2611_p8, %p3408_p7  ;;  %s2617_s23 = scalar_lea.vmem %s2616_s26, 512 }
  0xa3   : > { %p2618_p2 = scmp.lt.s32.totalorder %s2973_s14, %s2616_s26  ;;  %p2619_p4 = scmp.lt.s32.totalorder %s2617_s23, %s2610_s9 }
  0xa4   : > { %p2614_p10 = pneg %p2613_p1 }
  0xa5   : > { %p2620_p11 = por %p2619_p4, %p2618_p2 }
  0xa7   : > { %p2621_p6 = pnand %p2620_p11, %p2614_p10 }
  0xa9   : > { %2624 = shalt.err (!%p2621_p6)
}
  0xaa   : > { %2353 = dma.hbm_to_vmem [thread:$0]  (!%p3406_p13), %s2949_s27, 256, %s2973_s14, %s2913_s17, %s2700_s3, %s2700_s3, %s2701_s16  }
  0xab   : > { %p3409_p5 = scmp.ne.s32.totalorder %s3394_s1, 0 }
  0xac   : > { %p3410_p9 = scmp.eq.s32.totalorder (!%p3409_p5), %s2829_s0, 0 }
  0xad   : > { %665 = sbr.rel (%p3409_p5) target bundleno = 3779 (0xec3), region = 92 }
  0xb4   : > { %2668 = dma.done.wait (%p3410_p9), [#allocation3], 256   ;;  %p3411_p12 = pmov %p3410_p9 }
  0xb5   : > { %p3412_p0 = pmov %p3410_p9 }
  0xb6   : > { %2670 = vsyncadd (%p3411_p12), [#allocation3], 4294967040 }
  0xb7   : > { %2672 = dma.done.wait (%p3412_p0), [#allocation6], 272   ;;  %p3413_p3 = pmov %p3412_p0 }
  0xb8   : > { %s679_s24 = sand.u32 1, %s2829_s0   ;;  %s681_s3 = sand.u32 1, %s2689_s28  }
  0xb9   : > { %2674 = vsyncadd (%p3413_p3), [#allocation6], 4294967024  ;;  %s3032_s16 = sshll.u32 %s681_s3, 4  ;;  %s680_s1 = scalar_lea.sflag [#allocation9], %s679_s24 }
  0xba   : > { %p3414_p13 = scmp.ne.s32.totalorder %s3393_s19, 0 }
  0xbc   : > { %2676 = dma.done.wait (%p3414_p13), %s680_s1, 512  }
  0xbd   : > { %2678 = vsyncadd (%p3414_p13), %s680_s1, 4294966784  ;;  %p779_p8 = scmp.lt.s32.totalorder %s2829_s0, 1  ;;  %s3415_s25 = sld [smem:[#allocation25_spill]] }
  0xbe   : > { %s3416_s15 = sld [smem:[#allocation24_spill]]  ;;  %s3419_s24 = sld [smem:[#allocation29_spill]] }
  0xbf   : > { %s3041_s27 = scalar_select %p779_p8, %s2829_s0, 1 }
  0xc0   : > { %s3420_s19 = sld [smem:[#allocation30_spill]]  ;;  %s3421_s4 = sld [smem:[#allocation31_spill]] }
  0xc1   : > { %s2185_s14 = sshll.u32 %s3041_s27, 4  ;;  %s2186_s29 = sshll.u32 %s3041_s27, 5 }
  0xc2   : > { %s3422_s2 = sld [smem:[#allocation32_spill]]  ;;  %s3423_s8 = sld [smem:[#allocation33_spill]] }
  0xc3   : > { %s786_s21 = scalar_lea.vmem %s3415_s25, %s3041_s27  ;;  %p3425_p7 = scmp.ne.s32.totalorder %s2829_s0, 0 }
  0xc4   : > { %s3051_s12 = scalar_lea.vmem %s3416_s15, %s2185_s14  ;;  %s3065_s3 = scalar_lea.vmem %s3419_s24, %s2186_s29  ;;  %v2409_v0 = vld [vmem:[#allocation2] sm:$0xff] (!%p3425_p7)   ;;  %v2410_v1 = vld [vmem:[#allocation2 + $0x8] sm:$0xff] (!%p3425_p7)   ;;  %vm847_vm0 = vcmask (!%p3425_p7), 261120   ;;  %v2411_v8 = vld [vmem:[#allocation5] sm:$0xff] (!%p3425_p7)  }
  0xc5   : > { %s3424_s29 = sld [smem:[#allocation34_spill]]  ;;  %s692_s24 = scalar_lea.vmem [#allocation10], %s3032_s16  ;;  %2229 = vmatprep.subr.bf16.mxu0 (!%p3425_p7), %v2409_v0  ;;  %2237 = vmatprep.subr.bf16.mxu1 (!%p3425_p7), %v2411_v8  ;;  %v2412_v9 = vld [vmem:[#allocation5 + $0x8] sm:$0xff] (!%p3425_p7)   ;;  %v2140_v29 = vld [vmem:[#allocation7] ss:$0 sm:$0xff] (!%p3425_p7) }
  0xc6   : > { %s800_s25 = scalar_lea.vmem %s3420_s19, %s3041_s27  ;;  %s803_s15 = scalar_lea.vmem %s3421_s4, %s3041_s27  ;;  %2230 = vmatpush3.bf16.msra.mxu0 (!%p3425_p7), %v2409_v0  ;;  %2238 = vmatpush3.bf16.msra.mxu1 (!%p3425_p7), %v2411_v8 }
  0xc7   : > { %817 = sbr.rel (%p3425_p7) target bundleno = 652 (0x28c), region = 116  ;;  %s3426_s19 = sld [smem:[#allocation20_spill]] (!%p3425_p7)  ;;  %2231 = vmatprep.subr.bf16.mxu0 (!%p3425_p7), %v2410_v1  ;;  %2239 = vmatprep.subr.bf16.mxu1 (!%p3425_p7), %v2412_v9 }
  0xc8   : > { %s806_s6 = scalar_lea.vmem %s3422_s2, %s3041_s27  ;;  %s809_s9 = scalar_lea.vmem %s3423_s8, %s3041_s27 }
  0xc9   : > { %s3427_s22 = sld [smem:[#allocation22_spill]] (!%p3425_p7) }
  0xca   : > { %2232 = vmatpush3.bf16.msra.mxu0 (!%p3425_p7), %v2410_v1  ;;  %2240 = vmatpush3.bf16.msra.mxu1 (!%p3425_p7), %v2412_v9 }
  0xcb   : > { %s812_s23 = scalar_lea.vmem %s3424_s29, %s3041_s27  ;;  %s3428_s29 = sld [smem:[#allocation19_spill]] (!%p3425_p7) }
  0xcd   : > { %v818_v2 = vld [vmem:[%s3426_s19] sm:$0xff] (!%p3425_p7)  ;;  %v819_v3 = vld [vmem:[%s3426_s19 + $0x8] sm:$0xff] (!%p3425_p7)  ;;  %v820_v4 = vld [vmem:[%s3426_s19 + $0x10] sm:$0xff] (!%p3425_p7) }
  0xce   : > { %v822_v5 = vpack.c.bf16 %v819_v3, %v818_v2  ;;  %v821_v6 = vld [vmem:[%s3426_s19 + $0x18] sm:$0xff] }
  0xcf   : > { %v823_v7 = vpack.c.bf16 %v821_v6, %v820_v4  ;;  %v2135_v10 = vld [vmem:[%s3427_s22] ss:$0 sm:$0xff] }
  0xd0   : > { %2233 = vmatprep.mubr.msk.bf16.mxu0 %vm847_vm0, %v822_v5 }
  0xd1   : > { %2234 = vmatmul.mubr.msk.bf16.vlgmr.msra.gmra.mrb[0].mxu0 %vm847_vm0, %v823_v7  ;;  %s3429_s1 = smov %s3428_s29  ;;  %v997_v31 = vld [vmem:[%s3428_s29 + $0x10] sm:$0xff] }
  0xd2   : > { %v995_v34 = vld [vmem:[%s3429_s1] sm:$0xff]  ;;  %v998_v37 = vld [vmem:[%s3429_s1 + $0x18] sm:$0xff]  ;;  %v996_v41 = vld [vmem:[%s3429_s1 + $0x8] sm:$0xff] }
 0x1a4   : > { %v2235_v11 = vpop.f32.mrb[0].mxu0 }
 0x1a5   : > { %v897_v12 = vadd.f32 %v2235_v11, %v2135_v10  ;;  %v888_v13 = vpop.f32.mrb[1].mxu0 }
 0x1a6   : > { %v889_v14 = vadd.f32 %v2135_v10, %v888_v13  ;;  %v2236_v15 = vpop.f32.mrb[2].mxu0 }
 0x1a7   : > { %v909_v16 = vmul.f32 0.01, %v897_v12  ;;  %v900_v17 = vadd.f32 %v2236_v15, %v2135_v10  ;;  %v891_v18 = vpop.f32.mrb[3].mxu0  ;;  %vm905_vm1 = vcmp.ge.f32.partialorder %v897_v12, 0.0 }
 0x1a8   : > { %v907_v19 = vmul.f32 0.01, %v889_v14  ;;  %v892_v20 = vadd.f32 %v2135_v10, %v891_v18  ;;  %vm903_vm3 = vcmp.ge.f32.partialorder %v889_v14, 0.0 }
 0x1a9   : > { %vm906_vm2 = vcmp.ge.f32.partialorder %v900_v17, 0.0  ;;  %v910_v21 = vmul.f32 0.01, %v900_v17  ;;  %v913_v23 = vsel %vm905_vm1, %v897_v12, %v909_v16 }
 0x1aa   : > { %v908_v22 = vmul.f32 0.01, %v892_v20  ;;  %vm904_vm4 = vcmp.ge.f32.partialorder %v892_v20, 0.0  ;;  %v911_v26 = vsel %vm903_vm3, %v889_v14, %v907_v19 }
 0x1ab   : > { %v914_v24 = vsel %vm906_vm2, %v900_v17, %v910_v21 }
 0x1ac   : > { %v916_v25 = vpack.c.bf16 %v914_v24, %v913_v23  ;;  %v912_v27 = vsel %vm904_vm4, %v892_v20, %v908_v22 }
 0x1ad   : > { %v915_v28 = vpack.c.bf16 %v912_v27, %v911_v26 }
 0x1af   : > { %2241 = vmatprep.mubr.msk.bf16.mxu1 %vm847_vm0, %v915_v28 }
 0x1b0   : > { %2242 = vmatmul.mubr.msk.bf16.vlgmr.msra.gmra.mrb[0].mxu1 %vm847_vm0, %v916_v25 }
 0x283   : > { %v2243_v30 = vpop.f32.mrb[0].mxu1 }
 0x284   : > { %v989_v32 = vadd.f32 %v2243_v30, %v2140_v29  ;;  %v980_v33 = vpop.f32.mrb[1].mxu1 }
 0x285   : > { %v981_v35 = vadd.f32 %v2140_v29, %v980_v33  ;;  %v2244_v36 = vpop.f32.mrb[2].mxu1 }
 0x286   : > { %v1001_v38 = vadd.f32 %v997_v31, %v989_v32  ;;  %v992_v39 = vadd.f32 %v2244_v36, %v2140_v29  ;;  %v983_v40 = vpop.f32.mrb[3].mxu1 }
 0x287   : > { %v999_v42 = vadd.f32 %v995_v34, %v981_v35  ;;  %v984_v43 = vadd.f32 %v2140_v29, %v983_v40 }
 0x288   : > { %1005 = vst.msk [vmem:[#allocation11 + $0x10] sm:$0xff] %vm847_vm0, %v1001_v38  ;;  %v1002_v44 = vadd.f32 %v998_v37, %v992_v39 }
 0x289   : > { %1003 = vst.msk [vmem:[#allocation11] sm:$0xff] %vm847_vm0, %v999_v42  ;;  %v1000_v45 = vadd.f32 %v996_v41, %v984_v43 }
 0x28a   : > { %1006 = vst.msk [vmem:[#allocation11 + $0x18] sm:$0xff] %vm847_vm0, %v1002_v44 }
 0x28b   : > { %1004 = vst.msk [vmem:[#allocation11 + $0x8] sm:$0xff] %vm847_vm0, %v1000_v45 }
 0x28c PF: > { %v2423_v46 = vld [vmem:[%s3051_s12] sm:$0xff]   ;;  %v2424_v47 = vld [vmem:[%s3051_s12 + $0x8] sm:$0xff]   ;;  %vm1036_vm5 = vcmask 261120   ;;  %vm1103_vm6 = vcmask 130048   ;;  %s2706_s7 = smov 96   ;;  %v1092_v5 = vlaneseq  ;;  %s2708_s22 = smov 80  }
 0x28d   : > { %2245 = vmatprep.subr.bf16.mxu0 %v2423_v46  ;;  %v2145_v55 = vld [vmem:[%s786_s21] ss:$0 sm:$0xff]  ;;  %s2707_s21 = smov 64   ;;  %s2709_s8 = smov 112   ;;  %vm1768_vm8 = vcmask 523264  }
 0x28e   : > { %2246 = vmatpush3.bf16.msra.mxu0 %v2423_v46  ;;  %v3160_v6 = vand.u32 127, %v1092_v5  ;;  %s2710_s26 = smov 48   ;;  %s3431_s29 = scalar_lea.vmem [#allocation8], %s3032_s16 }
 0x28f   : > { %v3131_v50 = vld [vmem:[#allocation11 + $0x10] sm:$0xff]  ;;  %2247 = vmatprep.subr.bf16.mxu0 %v2424_v47  ;;  %s3432_s18 = smov %s3431_s29  ;;  %s2711_s14 = smov 16  }
 0x290   : > { %v3127_v48 = vld [vmem:[#allocation11] sm:$0xff]  ;;  %vm1094_vm7 = vcmp.lt.s32.totalorder %v3160_v6, 27  ;;  %s3433_s30 = sld [smem:[#allocation27_spill]]  ;;  %p2361_p1 = scmp.eq.s32.totalorder %s2829_s0, 1 }
 0x291   : > { %v3135_v52 = vld [vmem:[#allocation11 + $0x18] sm:$0xff] }
 0x292   : > { %v3129_v49 = vld [vmem:[#allocation11 + $0x8] sm:$0xff]  ;;  %v1012_v53 = vpack.c.bf16 %v3135_v52, %v3131_v50  ;;  %2248 = vmatpush3.bf16.msra.mxu0 %v2424_v47 }
 0x293   : > { %v1011_v51 = vpack.c.bf16 %v3129_v49, %v3127_v48 }
 0x295   : > { %2249 = vmatprep.mubr.msk.bf16.mxu0 %vm1036_vm5, %v1011_v51 }
 0x296   : > { %2250 = vmatmul.mubr.msk.bf16.vlgmr.msra.gmra.mrb[0].mxu0 %vm1036_vm5, %v1012_v53  ;;  %s3434_s17 = scalar_lea.vmem %s3433_s30, %s3041_s27 }
 0x369   : > { %v2251_v54 = vpop.f32.mrb[0].mxu0 }
 0x36a   : > { %v1077_v56 = vpop.f32.mrb[1].mxu0  ;;  %v1086_v58 = vadd.f32 %v2251_v54, %v2145_v55 }
 0x36b   : > { %v2252_v57 = vpop.f32.mrb[2].mxu0  ;;  %v1078_v61 = vadd.f32 %v2145_v55, %v1077_v56 }
 0x36c   : > { %v1089_v59 = vadd.f32 %v2252_v57, %v2145_v55  ;;  %v1080_v60 = vpop.f32.mrb[3].mxu0 }
 0x36d   : > { %v1081_v62 = vadd.f32 %v2145_v55, %v1080_v60 }
 0x36e   : > { %v3146_v63 = vpack.c.bf16 %v1089_v59, %v1086_v58 }
 0x36f   : > { %v3148_v0 = vpack.c.bf16 %v1081_v62, %v1078_v61 }
 0x371   : > { %1099 = vrot.lane.b32.xlu0 %v3148_v0, %s2706_s7  ;;  %2257 = vmatprep.mubr.msk.bf16.mxu1 %vm1103_vm6, %v3148_v0 }
 0x375   : > { %1101 = vrot.lane.b32.xlu0 %v3146_v63, %s2706_s7 }
 0x3e3   : > { %v1100_v1 = vpop.permute.xlu0 %1099 }
 0x3e4   : > { %2313 = vmatprep.subr.msk.bf16.mxu1 %vm1103_vm6, %v1100_v1  ;;  %v1111_v2 = vsel %vm1103_vm6, %v1100_v1, 0 }
 0x3e5   : > { %2254 = vmatpush3.bf16.xpose.msra.mxu1 %v1111_v2 }
 0x3e7   : > { %v1102_v3 = vpop.permute.xlu0 %1101 }
 0x3e8   : > { %2314 = vmatprep.subr.msk.bf16.mxu1 %vm1103_vm6, %v1102_v3  ;;  %v1114_v4 = vsel %vm1103_vm6, %v1102_v3, 0 }
 0x3ed   : > { %2256 = vmatpush3.bf16.xpose.msra.mxu1 %v1114_v4 }
 0x3f4   : > { %2258 = vmatmul.mubr.msk.bf16.vlgmr.msra.gmra.mrb[0].mxu1 %vm1103_vm6, %v3146_v63 }
 0x4c7   : > { %v2259_v7 = vpop.f32.mrb[0].mxu1 }
 0x4c8   : > { %v1167_v8 = vmul.f32 0.25, %v2259_v7  ;;  %v1150_v9 = vpop.f32.mrb[1].mxu1 }
 0x4c9   : > { %v1165_v10 = vmul.f32 0.25, %v1150_v9  ;;  %v2260_v11 = vpop.f32.mrb[2].mxu1 }
 0x4ca   : > { %v1153_v12 = vpop.f32.mrb[3].mxu1  ;;  %v1171_v13 = vsel %vm1094_vm7, %v1167_v8, -1e+30  ;;  %v1168_v18 = vmul.f32 0.25, %v2260_v11 }
 0x4cb   : > { %v1166_v14 = vmul.f32 0.25, %v1153_v12  ;;  %v1179_v15 = vsel %vm1036_vm5, %v1171_v13, -inf  ;;  %v1169_v16 = vsel %vm1094_vm7, %v1165_v10, -1e+30 }
 0x4cc   : > { %1180 = vmax.xlane.f32.xlu0 %v1179_v15  ;;  %v1173_v17 = vsel %vm1036_vm5, %v1169_v16, -inf  ;;  %v1172_v21 = vsel %vm1094_vm7, %v1168_v18, -1e+30 }
 0x4cd   : > { %1174 = vmax.xlane.f32.xlu1 %v1173_v17  ;;  %v1170_v19 = vsel %vm1094_vm7, %v1166_v14, -1e+30  ;;  %v1182_v22 = vsel %vm1036_vm5, %v1172_v21, -inf }
 0x4ce   : > { %v1176_v20 = vsel %vm1036_vm5, %v1170_v19, -inf }
 0x4d1   : > { %1177 = vmax.xlane.f32.xlu1 %v1176_v20 }
 0x4d5   : > { %1183 = vmax.xlane.f32.xlu1 %v1182_v22 }
 0x4e2   : > { %1221 = vrot.lane.b32.xlu0 %v3146_v63, %s2707_s21 }
 0x4e6   : > { %1219 = vrot.lane.b32.xlu1 %v3148_v0, %s2707_s21  ;;  %s3437_s21 = sld [smem:[#allocation28_spill]] }
 0x559   : > { %v1181_v23 = vpop.xlane.xlu0 %1180 }
 0x55a   : > { %v1187_v24 = vsub.f32 %v1171_v13, %v1181_v23  ;;  %v1175_v25 = vpop.xlane.xlu1 %1174 }
 0x55b   : > { %v1185_v26 = vsub.f32 %v1169_v16, %v1175_v25 }
 0x55c   : > { %v1193_v27 = vmul.f32 1.442695, %v1187_v24 }
 0x55d   : > { %v1189_v28 = vmul.f32 1.442695, %v1185_v26  ;;  %v1222_v37 = vpop.permute.xlu0 %1221 }
 0x55e   : > { %2433 = vpow2.f32 %v1193_v27  ;;  %v1178_v29 = vpop.xlane.xlu1 %1177 }
 0x55f   : > { %2435 = vpow2.f32 %v1189_v28  ;;  %v1186_v30 = vsub.f32 %v1170_v19, %v1178_v29 }
 0x561   : > { %v1191_v33 = vmul.f32 1.442695, %v1186_v30 }
 0x562   : > { %v1184_v31 = vpop.xlane.xlu1 %1183 }
 0x563   : > { %v1188_v32 = vsub.f32 %v1172_v21, %v1184_v31 }
 0x565   : > { %v1195_v34 = vmul.f32 1.442695, %v1188_v32 }
 0x566   : > { %v1220_v35 = vpop.permute.xlu1 %1219 }
 0x567   : > { %2437 = vpow2.f32 %v1195_v34  ;;  %2261 = vmatprep.subr.bf16.mxu0 %v1220_v35 }
 0x568   : > { %v2434_v36 = vpop.eup %2433  ;;  %2262 = vmatpush3.bf16.msra.mxu0 %v1220_v35  ;;  %2439 = vpow2.f32 %v1191_v33 }
 0x569   : > { %2263 = vmatprep.subr.bf16.mxu0 %v1222_v37  ;;  %v1203_v38 = vsel %vm1036_vm5, %v2434_v36, 0.0  ;;  %v2436_v39 = vpop.eup %2435 }
 0x56a   : > { %1204 = vadd.xlane.f32.xlu1 %v1203_v38  ;;  %v1197_v40 = vsel %vm1036_vm5, %v2436_v39, 0.0 }
 0x56c   : > { %2264 = vmatpush3.bf16.msra.mxu0 %v1222_v37 }
 0x56e   : > { %1198 = vadd.xlane.f32.xlu1 %v1197_v40 }
 0x571   : > { %v2438_v41 = vpop.eup %2437 }
 0x572   : > { %v1206_v42 = vsel %vm1036_vm5, %v2438_v41, 0.0  ;;  %v2440_v43 = vpop.eup %2439 }
 0x573   : > { %1207 = vadd.xlane.f32.xlu1 %v1206_v42  ;;  %v1200_v44 = vsel %vm1036_vm5, %v2440_v43, 0.0 }
 0x577   : > { %1201 = vadd.xlane.f32.xlu1 %v1200_v44 }
 0x588   : > { %1284 = vrot.lane.b32.xlu1 %v3148_v0, %s2708_s22 }
 0x58c   : > { %1286 = vrot.lane.b32.xlu1 %v3146_v63, %s2708_s22  ;;  %s3438_s22 = scalar_lea.vmem %s3437_s21, %s3041_s27 }
 0x590   : > { %1280 = vrot.lane.b32.xlu1 %v3148_v0, %s2709_s8 }
 0x594   : > { %1282 = vrot.lane.b32.xlu1 %v3146_v63, %s2709_s8 }
 0x5f7   : > { %v1205_v45 = vpop.xlane.xlu1 %1204 }
 0x5fb   : > { %v1199_v46 = vpop.xlane.xlu1 %1198 }
 0x600   : > { %v1208_v47 = vpop.xlane.xlu1 %1207 }
 0x601   : > { %2441 = vrcp.f32 %v1208_v47 }
 0x602   : > { %2443 = vrcp.f32 %v1199_v46 }
 0x603   : > { %2445 = vrcp.f32 %v1205_v45 }
 0x604   : > { %v1202_v51 = vpop.xlane.xlu1 %1201 }
 0x605   : > { %2447 = vrcp.f32 %v1202_v51 }
 0x608   : > { %v1285_v53 = vpop.permute.xlu1 %1284 }
 0x609   : > { %2315 = vmatprep.subr.msk.bf16.mxu0 %vm1103_vm6, %v1285_v53  ;;  %v1295_v3 = vsel %vm1103_vm6, %v1285_v53, 0 }
 0x60b   : > { %v2442_v54 = vpop.eup %2441 }
 0x60c   : > { %v2444_v55 = vpop.eup %2443  ;;  %v1216_v58 = vmul.f32 %v2442_v54, %v2438_v41  ;;  %v1287_v59 = vpop.permute.xlu1 %1286 }
 0x60d   : > { %v2446_v56 = vpop.eup %2445  ;;  %v1213_v60 = vmul.f32 %v2444_v55, %v2436_v39  ;;  %v1298_v5 = vsel %vm1103_vm6, %v1287_v59, 0 }
 0x60e   : > { %v1215_v62 = vmul.f32 %v2446_v56, %v2434_v36 }
 0x60f   : > { %v2448_v57 = vpop.eup %2447 }
 0x610   : > { %v1214_v61 = vmul.f32 %v2448_v57, %v2440_v43  ;;  %v1218_v2 = vpack.c.bf16 %v1216_v58, %v1215_v62  ;;  %v1281_v4 = vpop.permute.xlu1 %1280 }
 0x612   : > { %v1217_v1 = vpack.c.bf16 %v1214_v61, %v1213_v60 }
 0x614   : > { %2265 = vmatprep.mubr.msk.bf16.mxu0 %vm1036_vm5, %v1217_v1  ;;  %v1283_v7 = vpop.permute.xlu1 %1282 }
 0x615   : > { %2266 = vmatmul.mubr.msk.bf16.vlgmr.msra.gmra.mrb[4].mxu0 %vm1036_vm5, %v1218_v2 }
 0x616   : > { %2270 = vmatpush3.bf16.xpose.msra.mxu0 %v1295_v3  ;;  %2273 = vmatprep.mubr.msk.bf16.mxu0 %vm1103_vm6, %v1281_v4  ;;  %v2425_v3 = vld [vmem:[%s3431_s29] sm:$0xff]  }
 0x617   : > { %2316 = vmatprep.subr.msk.bf16.mxu0 %vm1103_vm6, %v1287_v59  ;;  %v2426_v4 = vld [vmem:[%s3432_s18 + $0x8] sm:$0xff]  }
 0x61e   : > { %2272 = vmatpush3.bf16.xpose.msra.mxu0 %v1298_v5 }
 0x625   : > { %2274 = vmatmul.mubr.msk.bf16.vlgmr.msra.gmra.mrb[8].mxu0 %vm1103_vm6, %v1283_v7 }
 0x6e8   : > { %v3193_v8 = vpop.f32.mrb[4].mxu0 }
 0x6e9   : > { %v3195_v9 = vpop.f32.mrb[5].mxu0 }
 0x6ea   : > { %v3197_v10 = vpop.f32.mrb[6].mxu0 }
 0x6eb   : > { %v3199_v11 = vpop.f32.mrb[7].mxu0 }
 0x6f8   : > { %v2275_v12 = vpop.f32.mrb[8].mxu0 }
 0x6f9   : > { %v1334_v13 = vpop.f32.mrb[9].mxu0  ;;  %v1351_v14 = vmul.f32 0.25, %v2275_v12 }
 0x6fa   : > { %v1349_v15 = vmul.f32 0.25, %v1334_v13  ;;  %v2276_v16 = vpop.f32.mrb[10].mxu0 }
 0x6fb   : > { %v1337_v17 = vpop.f32.mrb[11].mxu0  ;;  %v1352_v21 = vmul.f32 0.25, %v2276_v16  ;;  %v1355_v23 = vsel %vm1094_vm7, %v1351_v14, -1e+30 }
 0x6fc   : > { %v1350_v18 = vmul.f32 0.25, %v1337_v17  ;;  %v1353_v19 = vsel %vm1094_vm7, %v1349_v15, -1e+30  ;;  %v1363_v25 = vsel %vm1036_vm5, %v1355_v23, -inf }
 0x6fd   : > { %v1357_v20 = vsel %vm1036_vm5, %v1353_v19, -inf  ;;  %v1356_v26 = vsel %vm1094_vm7, %v1352_v21, -1e+30 }
 0x6fe   : > { %1358 = vmax.xlane.f32.xlu0 %v1357_v20  ;;  %v1354_v22 = vsel %vm1094_vm7, %v1350_v18, -1e+30  ;;  %v1366_v27 = vsel %vm1036_vm5, %v1356_v26, -inf }
 0x6ff   : > { %v1360_v24 = vsel %vm1036_vm5, %v1354_v22, -inf }
 0x700   : > { %1361 = vmax.xlane.f32.xlu1 %v1360_v24 }
 0x702   : > { %1364 = vmax.xlane.f32.xlu0 %v1363_v25 }
 0x706   : > { %1367 = vmax.xlane.f32.xlu0 %v1366_v27 }
 0x78b   : > { %v1359_v28 = vpop.xlane.xlu0 %1358 }
 0x78c   : > { %v1369_v29 = vsub.f32 %v1353_v19, %v1359_v28 }
 0x78d   : > { %v1362_v30 = vpop.xlane.xlu1 %1361 }
 0x78e   : > { %v1373_v33 = vmul.f32 1.442695, %v1369_v29  ;;  %v1370_v34 = vsub.f32 %v1354_v22, %v1362_v30 }
 0x78f   : > { %v1365_v31 = vpop.xlane.xlu0 %1364 }
 0x790   : > { %v1371_v32 = vsub.f32 %v1355_v23, %v1365_v31  ;;  %v1375_v38 = vmul.f32 1.442695, %v1370_v34 }
 0x792   : > { %v1377_v35 = vmul.f32 1.442695, %v1371_v32 }
 0x793   : > { %v1368_v36 = vpop.xlane.xlu0 %1367 }
 0x794   : > { %2449 = vpow2.f32 %v1377_v35  ;;  %v1372_v37 = vsub.f32 %v1356_v26, %v1368_v36 }
 0x795   : > { %2451 = vpow2.f32 %v1373_v33 }
 0x796   : > { %v1379_v39 = vmul.f32 1.442695, %v1372_v37 }
 0x798   : > { %2453 = vpow2.f32 %v1379_v39 }
 0x799   : > { %2455 = vpow2.f32 %v1375_v38 }
 0x79e   : > { %v2450_v6 = vpop.eup %2449 }
 0x79f   : > { %v1387_v40 = vsel %vm1036_vm5, %v2450_v6, 0.0  ;;  %v2452_v41 = vpop.eup %2451 }
 0x7a0   : > { %1388 = vadd.xlane.f32.xlu1 %v1387_v40  ;;  %v1381_v44 = vsel %vm1036_vm5, %v2452_v41, 0.0 }
 0x7a2   : > { %v2454_v42 = vpop.eup %2453 }
 0x7a3   : > { %v1390_v43 = vsel %vm1036_vm5, %v2454_v42, 0.0  ;;  %v2456_v45 = vpop.eup %2455 }
 0x7a4   : > { %1391 = vadd.xlane.f32.xlu0 %v1390_v43  ;;  %1382 = vadd.xlane.f32.xlu1 %v1381_v44  ;;  %v1384_v46 = vsel %vm1036_vm5, %v2456_v45, 0.0 }
 0x7a8   : > { %1385 = vadd.xlane.f32.xlu0 %v1384_v46 }
 0x7b5   : > { %1403 = vrot.lane.b32.xlu1 %v3148_v0, %s2710_s26 }
 0x7be   : > { %1405 = vrot.lane.b32.xlu0 %v3146_v63, %s2710_s26 }
 0x82d   : > { %v1389_v47 = vpop.xlane.xlu1 %1388 }
 0x831   : > { %v1392_v51 = vpop.xlane.xlu0 %1391  ;;  %v1383_v53 = vpop.xlane.xlu1 %1382 }
 0x832   : > { %2457 = vrcp.f32 %v1392_v51 }
 0x833   : > { %2459 = vrcp.f32 %v1383_v53 }
 0x834   : > { %2461 = vrcp.f32 %v1389_v47 }
 0x835   : > { %v1386_v54 = vpop.xlane.xlu0 %1385  ;;  %v1404_v55 = vpop.permute.xlu1 %1403 }
 0x836   : > { %2463 = vrcp.f32 %v1386_v54  ;;  %2277 = vmatprep.subr.bf16.mxu1 %v1404_v55 }
 0x837   : > { %2278 = vmatpush3.bf16.msra.mxu1 %v1404_v55 }
 0x839   : > { %v1406_v56 = vpop.permute.xlu0 %1405 }
 0x83a   : > { %2279 = vmatprep.subr.bf16.mxu1 %v1406_v56 }
 0x83b   : > { %2280 = vmatpush3.bf16.msra.mxu1 %v1406_v56 }
 0x83c   : > { %v2458_v57 = vpop.eup %2457  ;;  %2285 = vmatprep.subr.bf16.mxu1 %v2425_v3 }
 0x83d   : > { %v2460_v0 = vpop.eup %2459  ;;  %v1400_v59 = vmul.f32 %v2458_v57, %v2454_v42 }
 0x83e   : > { %v2462_v58 = vpop.eup %2461  ;;  %v1397_v60 = vmul.f32 %v2460_v0, %v2452_v41 }
 0x83f   : > { %v1399_v62 = vmul.f32 %v2462_v58, %v2450_v6 }
 0x840   : > { %v2464_v63 = vpop.eup %2463 }
 0x841   : > { %v1398_v61 = vmul.f32 %v2464_v63, %v2456_v45  ;;  %v1402_v2 = vpack.c.bf16 %v1400_v59, %v1399_v62  ;;  %v2427_v63 = vld [vmem:[%s692_s24] sm:$0xff]   ;;  %v2428_v59 = vld [vmem:[%s692_s24 + $0x8] sm:$0xff]  }
 0x842   : > { %2293 = vmatprep.subr.bf16.mxu0 %v2427_v63 }
 0x843   : > { %v1401_v1 = vpack.c.bf16 %v1398_v61, %v1397_v60  ;;  %2294 = vmatpush3.bf16.msra.mxu0 %v2427_v63  ;;  %v2429_v60 = vld [vmem:[%s3065_s3] sm:$0xff]   ;;  %v2430_v61 = vld [vmem:[%s3065_s3 + $0x8] sm:$0xff]  }
 0x844   : > { %2295 = vmatprep.subr.bf16.mxu0 %v2428_v59 }
 0x845   : > { %2281 = vmatprep.mubr.msk.bf16.mxu1 %vm1036_vm5, %v1401_v1 }
 0x846   : > { %2282 = vmatmul.mubr.msk.bf16.vlgmr.msra.gmra.mrb[4].mxu1 %vm1036_vm5, %v1402_v2 }
 0x847   : > { %2286 = vmatpush3.bf16.msra.mxu1 %v2425_v3  ;;  %2296 = vmatpush3.bf16.msra.mxu0 %v2428_v59 }
 0x848   : > { %2287 = vmatprep.subr.bf16.mxu1 %v2426_v4 }
 0x84b   : > { %2288 = vmatpush3.bf16.msra.mxu1 %v2426_v4 }
 0x84c   : > { %2301 = vmatprep.subr.bf16.mxu1 %v2429_v60 }
 0x919   : > { %v2283_v5 = vpop.f32.mrb[4].mxu1 }
 0x91a   : > { %v1449_v7 = vpop.f32.mrb[5].mxu1 }
 0x91b   : > { %v2284_v12 = vpop.f32.mrb[6].mxu1 }
 0x91c   : > { %v2418_v13 = vpack.i.bf16 %v2284_v12, %v2283_v5  ;;  %v1452_v14 = vpop.f32.mrb[7].mxu1 }
 0x91d   : > { %v2413_v15 = vpack.i.bf16 %v1452_v14, %v1449_v7 }
 0x91f   : > { %2414 = vrot.lane.b32.xlu1 %v2413_v15, %s2711_s14 }
 0x923   : > { %2419 = vrot.lane.b32.xlu1 %v2418_v13, %s2711_s14 }
 0x991   : > { %v2415_v16 = vpop.permute.xlu1 %2414 }
 0x992   : > { %v2417_v17 = vunpack.i.h.bf16 %v2415_v16  ;;  %v2416_v18 = vunpack.i.l.bf16 %v2415_v16 }
 0x994   : > { %v1481_v19 = vsel %vm1103_vm6, %v3199_v11, %v2417_v17  ;;  %v1480_v20 = vsel %vm1103_vm6, %v3195_v9, %v2416_v18  ;;  %v2158_v9 = vld [vmem:[%s3434_s17] ss:$0 sm:$0xff] }
 0x995   : > { %v1484_v21 = vpack.c.bf16 %v1481_v19, %v1480_v20  ;;  %v2420_v22 = vpop.permute.xlu1 %2419  ;;  %v2163_v18 = vld [vmem:[%s803_s15] ss:$0 sm:$0xff] }
 0x996   : > { %v2422_v23 = vunpack.i.h.bf16 %v2420_v22  ;;  %v2421_v24 = vunpack.i.l.bf16 %v2420_v22 }
 0x997   : > { %2289 = vmatprep.mubr.msk.bf16.mxu1 %vm1036_vm5, %v1484_v21 }
 0x998   : > { %v1483_v25 = vsel %vm1103_vm6, %v3197_v10, %v2422_v23  ;;  %v1482_v26 = vsel %vm1103_vm6, %v3193_v8, %v2421_v24  ;;  %v2164_v24 = vld [vmem:[%s806_s6] ss:$0 sm:$0xff] }
 0x999   : > { %v1485_v27 = vpack.c.bf16 %v1483_v25, %v1482_v26 }
 0x99b   : > { %2290 = vmatmul.mubr.msk.bf16.vlgmr.msra.gmra.mrb[8].mxu1 %vm1036_vm5, %v1485_v27 }
 0x99c   : > { %2302 = vmatpush3.bf16.msra.mxu1 %v2429_v60 }
 0x99d   : > { %2303 = vmatprep.subr.bf16.mxu1 %v2430_v61 }
 0x9a0   : > { %2304 = vmatpush3.bf16.msra.mxu1 %v2430_v61 }
 0xa6e   : > { %v2291_v11 = vpop.f32.mrb[8].mxu1 }
 0xa6f   : > { %v1549_v28 = vpop.f32.mrb[9].mxu1  ;;  %v1558_v29 = vadd.f32 %v2291_v11, %v2158_v9 }
 0xa70   : > { %v1550_v30 = vadd.f32 %v2158_v9, %v1549_v28  ;;  %v2292_v31 = vpop.f32.mrb[10].mxu1 }
 0xa71   : > { %v1552_v32 = vpop.f32.mrb[11].mxu1  ;;  %v1561_v34 = vadd.f32 %v2292_v31, %v2158_v9  ;;  %v1566_v36 = vadd.f32 %v1558_v29, %v3131_v50 }
 0xa72   : > { %v1553_v33 = vadd.f32 %v2158_v9, %v1552_v32  ;;  %v1564_v10 = vadd.f32 %v1550_v30, %v3127_v48 }
 0xa73   : > { %v1574_v38 = vsel %vm1036_vm5, %v1566_v36, 0.0  ;;  %v1567_v39 = vadd.f32 %v1561_v34, %v3135_v52  ;;  %v2431_v34 = vld [vmem:[%s3065_s3 + $0x10] sm:$0xff]  }
 0xa74   : > { %v1568_v8 = vsel %vm1036_vm5, %v1564_v10, 0.0  ;;  %v1565_v35 = vadd.f32 %v1553_v33, %v3129_v49  ;;  %2305 = vmatprep.subr.bf16.mxu1 %v2431_v34 }
 0xa75   : > { %1569 = vadd.xlane.f32.xlu0 %v1568_v8  ;;  %v1577_v6 = vsel %vm1036_vm5, %v1567_v39, 0.0  ;;  %2306 = vmatpush3.bf16.msra.mxu1 %v2431_v34  ;;  %v2432_v8 = vld [vmem:[%s3065_s3 + $0x18] sm:$0xff]  }
 0xa76   : > { %v1571_v37 = vsel %vm1036_vm5, %v1565_v35, 0.0  ;;  %2307 = vmatprep.subr.bf16.mxu1 %v2432_v8 }
 0xa77   : > { %1572 = vadd.xlane.f32.xlu1 %v1571_v37 }
 0xa79   : > { %1575 = vadd.xlane.f32.xlu0 %v1574_v38  ;;  %2308 = vmatpush3.bf16.msra.mxu1 %v2432_v8 }
 0xa7d   : > { %1578 = vadd.xlane.f32.xlu0 %v1577_v6 }
 0xb02   : > { %v1570_v48 = vpop.xlane.xlu0 %1569 }
 0xb03   : > { %v1581_v40 = vmul.f32 0.03125, %v1570_v48 }
 0xb04   : > { %v1573_v41 = vpop.xlane.xlu1 %1572 }
 0xb05   : > { %v1585_v42 = vsub.f32 %v1564_v10, %v1581_v40  ;;  %v1582_v43 = vmul.f32 0.03125, %v1573_v41 }
 0xb06   : > { %v1576_v49 = vpop.xlane.xlu0 %1575 }
 0xb07   : > { %v1586_v44 = vsub.f32 %v1565_v35, %v1582_v43  ;;  %v1583_v50 = vmul.f32 0.03125, %v1576_v49  ;;  %v1589_v45 = vmul.f32 %v1585_v42, %v1585_v42  ;;  %v2165_v35 = vld [vmem:[%s3438_s22] ss:$0 sm:$0xff] }
 0xb09   : > { %v1587_v46 = vsub.f32 %v1566_v36, %v1583_v50  ;;  %v1593_v47 = vsel %vm1036_vm5, %v1589_v45, 0.0  ;;  %v1590_v51 = vmul.f32 %v1586_v44, %v1586_v44 }
 0xb0a   : > { %1594 = vadd.xlane.f32.xlu1 %v1593_v47  ;;  %v1579_v52 = vpop.xlane.xlu0 %1578 }
 0xb0b   : > { %v1584_v53 = vmul.f32 0.03125, %v1579_v52  ;;  %v1596_v54 = vsel %vm1036_vm5, %v1590_v51, 0.0  ;;  %v1591_v55 = vmul.f32 %v1587_v46, %v1587_v46 }
 0xb0c   : > { %1597 = vadd.xlane.f32.xlu0 %v1596_v54 }
 0xb0d   : > { %v1588_v56 = vsub.f32 %v1567_v39, %v1584_v53  ;;  %v1599_v57 = vsel %vm1036_vm5, %v1591_v55, 0.0 }
 0xb0e   : > { %1600 = vadd.xlane.f32.xlu1 %v1599_v57 }
 0xb0f   : > { %v1592_v0 = vmul.f32 %v1588_v56, %v1588_v56 }
 0xb11   : > { %v1602_v58 = vsel %vm1036_vm5, %v1592_v0, 0.0 }
 0xb12   : > { %1603 = vadd.xlane.f32.xlu0 %v1602_v58 }
 0xb97   : > { %v1595_v62 = vpop.xlane.xlu1 %1594 }
 0xb98   : > { %v1605_v1 = vmul.f32 0.03125, %v1595_v62 }
 0xb99   : > { %v1598_v2 = vpop.xlane.xlu0 %1597 }
 0xb9a   : > { %v1609_v3 = vadd.f32 1e-05, %v1605_v1  ;;  %v1606_v4 = vmul.f32 0.03125, %v1598_v2 }
 0xb9b   : > { %v1601_v5 = vpop.xlane.xlu1 %1600 }
 0xb9c   : > { %2465 = vrsqrt.f32 %v1609_v3  ;;  %v1610_v7 = vadd.f32 1e-05, %v1606_v4  ;;  %v1607_v12 = vmul.f32 0.03125, %v1601_v5 }
 0xb9e   : > { %2467 = vrsqrt.f32 %v1610_v7  ;;  %v1611_v13 = vadd.f32 1e-05, %v1607_v12 }
 0xb9f   : > { %v1604_v14 = vpop.xlane.xlu0 %1603 }
 0xba0   : > { %2469 = vrsqrt.f32 %v1611_v13  ;;  %v1608_v15 = vmul.f32 0.03125, %v1604_v14 }
 0xba2   : > { %v1612_v16 = vadd.f32 1e-05, %v1608_v15 }
 0xba4   : > { %2471 = vrsqrt.f32 %v1612_v16 }
 0xba6   : > { %v2466_v17 = vpop.eup %2465 }
 0xba7   : > { %v1617_v19 = vmul.f32 %v2466_v17, %v1585_v42 }
 0xba8   : > { %v2468_v20 = vpop.eup %2467 }
 0xba9   : > { %v1618_v21 = vmul.f32 %v2468_v20, %v1586_v44  ;;  %v1628_v22 = vmul.f32 %v2163_v18, %v1617_v19 }
 0xbaa   : > { %v2470_v23 = vpop.eup %2469 }
 0xbab   : > { %v1619_v25 = vmul.f32 %v2470_v23, %v1587_v46  ;;  %v1629_v26 = vmul.f32 %v2163_v18, %v1618_v21  ;;  %v1639_v27 = vadd.f32 %v2164_v24, %v1628_v22  ;;  %v2170_v46 = vld [vmem:[%s800_s25] ss:$0 sm:$0xff] }
 0xbad   : > { %v1640_v9 = vadd.f32 %v2164_v24, %v1629_v26  ;;  %v1630_v28 = vmul.f32 %v2163_v18, %v1619_v25 }
 0xbae   : > { %v2472_v11 = vpop.eup %2471 }
 0xbaf   : > { %v1620_v29 = vmul.f32 %v2472_v11, %v1588_v56  ;;  %v1643_v30 = vpack.c.bf16 %v1640_v9, %v1639_v27  ;;  %v1641_v32 = vadd.f32 %v2164_v24, %v1630_v28 }
 0xbb1   : > { %v1631_v31 = vmul.f32 %v2163_v18, %v1620_v29  ;;  %2297 = vmatprep.mubr.msk.bf16.mxu0 %vm1036_vm5, %v1643_v30 }
 0xbb3   : > { %v1642_v33 = vadd.f32 %v2164_v24, %v1631_v31 }
 0xbb5   : > { %v1644_v10 = vpack.c.bf16 %v1642_v33, %v1641_v32 }
 0xbb7   : > { %2298 = vmatmul.mubr.msk.bf16.vlgmr.msra.gmra.mrb[12].mxu0 %vm1036_vm5, %v1644_v10 }
 0xc8a   : > { %v2299_v36 = vpop.f32.mrb[12].mxu0 }
 0xc8b   : > { %v1717_v37 = vadd.f32 %v2299_v36, %v2165_v35  ;;  %v1708_v38 = vpop.f32.mrb[13].mxu0  ;;  %v2177_v36 = vld [vmem:[%s809_s9] ss:$0 sm:$0xff]  ;;  %s2712_s9 = smov [#allocation11]  }
 0xc8c   : > { %v1709_v39 = vadd.f32 %v2165_v35, %v1708_v38  ;;  %v2300_v6 = vpop.f32.mrb[14].mxu0  ;;  %s1912_s30 = sshll.u32 %s2712_s9, 4  ;;  %s1913_s30 = int_to_ptr.vmem [resolvable:$true] %s1912_s30 }
 0xc8d   : > { %v1720_v48 = vadd.f32 %v2300_v6, %v2165_v35  ;;  %v1711_v40 = vpop.f32.mrb[15].mxu0  ;;  %v1725_v42 = vmax.f32 %v1717_v37, 0.0  ;;  %s2625_s27 = scalar_lea.vmem %s1913_s30, 512  ;;  %p2632_p11 = scmp.lt.s32.totalorder %s1913_s30, %s1913_s30 }
 0xc8e   : > { %v1712_v41 = vadd.f32 %v2165_v35, %v1711_v40  ;;  %v1723_v49 = vmax.f32 %v1709_v39, 0.0  ;;  %v2178_v39 = vld [vmem:[%s812_s23] ss:$0 sm:$0xff]  ;;  %p2626_p10 = scmp.ne.s32.totalorder %s1913_s30, %s2625_s27  ;;  %p2633_p6 = scmp.lt.s32.totalorder %s2625_s27, %s2625_s27 }
 0xc8f   : > { %v1726_v43 = vmax.f32 %v1720_v48, 0.0 }
 0xc90   : > { %v1724_v44 = vmax.f32 %v1712_v41, 0.0  ;;  %p2627_p2 = pnand %p2626_p10, %p2361_p1  ;;  %p2634_p5 = por %p2633_p6, %p2632_p11 }
 0xc91   : > { %v1728_v50 = vpack.c.bf16 %v1726_v43, %v1725_v42 }
 0xc92   : > { %v1727_v45 = vpack.c.bf16 %v1724_v44, %v1723_v49  ;;  %p2628_p4 = pneg %p2627_p2 }
 0xc94   : > { %2309 = vmatprep.mubr.msk.bf16.mxu1 %vm1768_vm8, %v1727_v45  ;;  %p2635_p9 = pnand %p2634_p5, %p2628_p4 }
 0xc95   : > { %2310 = vmatmul.mubr.msk.bf16.vlgmr.msra.gmra.mrb[12].mxu1 %vm1768_vm8, %v1728_v50 }
 0xd68   : > { %v2311_v47 = vpop.f32.mrb[12].mxu1 }
 0xd69   : > { %v1809_v51 = vpop.f32.mrb[13].mxu1  ;;  %v1818_v52 = vadd.f32 %v2311_v47, %v2170_v46 }
 0xd6a   : > { %v1810_v53 = vadd.f32 %v2170_v46, %v1809_v51  ;;  %v2312_v54 = vpop.f32.mrb[14].mxu1 }
 0xd6b   : > { %v1812_v55 = vpop.f32.mrb[15].mxu1  ;;  %v1821_v56 = vadd.f32 %v2312_v54, %v2170_v46  ;;  %v1826_v59 = vadd.f32 %v1818_v52, %v1641_v32 }
 0xd6c   : > { %v1813_v57 = vadd.f32 %v2170_v46, %v1812_v55  ;;  %v1824_v0 = vadd.f32 %v1810_v53, %v1639_v27 }
 0xd6d   : > { %v1827_v61 = vadd.f32 %v1821_v56, %v1642_v33  ;;  %v1834_v62 = vsel %vm1036_vm5, %v1826_v59, 0.0 }
 0xd6e   : > { %v1828_v58 = vsel %vm1036_vm5, %v1824_v0, 0.0  ;;  %v1825_v63 = vadd.f32 %v1813_v57, %v1640_v9 }
 0xd6f   : > { %1829 = vadd.xlane.f32.xlu1 %v1828_v58  ;;  %v1837_v1 = vsel %vm1036_vm5, %v1827_v61, 0.0 }
 0xd70   : > { %v1831_v60 = vsel %vm1036_vm5, %v1825_v63, 0.0 }
 0xd71   : > { %1832 = vadd.xlane.f32.xlu0 %v1831_v60 }
 0xd73   : > { %1835 = vadd.xlane.f32.xlu1 %v1834_v62 }
 0xd75   : > { %1838 = vadd.xlane.f32.xlu0 %v1837_v1 }
 0xdfc   : > { %v1830_v2 = vpop.xlane.xlu1 %1829 }
 0xdfd   : > { %v1840_v3 = vmul.f32 0.03125, %v1830_v2 }
 0xdfe   : > { %v1833_v4 = vpop.xlane.xlu0 %1832 }
 0xdff   : > { %v1844_v5 = vsub.f32 %v1824_v0, %v1840_v3  ;;  %v1841_v7 = vmul.f32 0.03125, %v1833_v4 }
 0xe00   : > { %v1836_v12 = vpop.xlane.xlu1 %1835 }
 0xe01   : > { %v1845_v13 = vsub.f32 %v1825_v63, %v1841_v7  ;;  %v1842_v14 = vmul.f32 0.03125, %v1836_v12  ;;  %v1848_v15 = vmul.f32 %v1844_v5, %v1844_v5 }
 0xe02   : > { %v1839_v16 = vpop.xlane.xlu0 %1838 }
 0xe03   : > { %v1846_v17 = vsub.f32 %v1826_v59, %v1842_v14  ;;  %v1843_v18 = vmul.f32 0.03125, %v1839_v16  ;;  %v1852_v19 = vsel %vm1036_vm5, %v1848_v15, 0.0  ;;  %v1849_v20 = vmul.f32 %v1845_v13, %v1845_v13 }
 0xe04   : > { %1853 = vadd.xlane.f32.xlu1 %v1852_v19 }
 0xe05   : > { %v1847_v21 = vsub.f32 %v1827_v61, %v1843_v18  ;;  %v1855_v22 = vsel %vm1036_vm5, %v1849_v20, 0.0  ;;  %v1850_v23 = vmul.f32 %v1846_v17, %v1846_v17 }
 0xe06   : > { %1856 = vadd.xlane.f32.xlu0 %v1855_v22 }
 0xe07   : > { %v1858_v24 = vsel %vm1036_vm5, %v1850_v23, 0.0  ;;  %v1851_v25 = vmul.f32 %v1847_v21, %v1847_v21 }
 0xe08   : > { %1859 = vadd.xlane.f32.xlu1 %v1858_v24 }
 0xe09   : > { %v1861_v26 = vsel %vm1036_vm5, %v1851_v25, 0.0 }
 0xe0a   : > { %1862 = vadd.xlane.f32.xlu0 %v1861_v26 }
 0xe91   : > { %v1854_v27 = vpop.xlane.xlu1 %1853 }
 0xe92   : > { %v1864_v9 = vmul.f32 0.03125, %v1854_v27 }
 0xe93   : > { %v1857_v11 = vpop.xlane.xlu0 %1856 }
 0xe94   : > { %v1868_v28 = vadd.f32 1e-05, %v1864_v9  ;;  %v1865_v29 = vmul.f32 0.03125, %v1857_v11 }
 0xe95   : > { %v1860_v30 = vpop.xlane.xlu1 %1859 }
 0xe96   : > { %2473 = vrsqrt.f32 %v1868_v28  ;;  %v1869_v31 = vadd.f32 1e-05, %v1865_v29  ;;  %v1866_v32 = vmul.f32 0.03125, %v1860_v30 }
 0xe97   : > { %v1863_v33 = vpop.xlane.xlu0 %1862 }
 0xe98   : > { %2475 = vrsqrt.f32 %v1869_v31  ;;  %v1870_v10 = vadd.f32 1e-05, %v1866_v32  ;;  %v1867_v34 = vmul.f32 0.03125, %v1863_v33 }
 0xe9a   : > { %2477 = vrsqrt.f32 %v1870_v10  ;;  %v1871_v8 = vadd.f32 1e-05, %v1867_v34 }
 0xe9c   : > { %2479 = vrsqrt.f32 %v1871_v8 }
 0xea0   : > { %v2474_v35 = vpop.eup %2473 }
 0xea1   : > { %v1876_v37 = vmul.f32 %v2474_v35, %v1844_v5 }
 0xea2   : > { %v2476_v38 = vpop.eup %2475 }
 0xea3   : > { %v1887_v6 = vmul.f32 %v2177_v36, %v1876_v37  ;;  %v1877_v48 = vmul.f32 %v2476_v38, %v1845_v13 }
 0xea4   : > { %v2478_v40 = vpop.eup %2477 }
 0xea5   : > { %v1898_v41 = vadd.f32 %v2178_v39, %v1887_v6  ;;  %v1888_v42 = vmul.f32 %v2177_v36, %v1877_v48  ;;  %v1878_v43 = vmul.f32 %v2478_v40, %v1846_v17 }
 0xea6   : > { %v2480_v49 = vpop.eup %2479 }
 0xea7   : > { %1902 = vst.msk [vmem:[#allocation11] sm:$0xff] %vm1036_vm5, %v1898_v41  ;;  %v1899_v44 = vadd.f32 %v2178_v39, %v1888_v42  ;;  %v1889_v50 = vmul.f32 %v2177_v36, %v1878_v43  ;;  %v1879_v45 = vmul.f32 %v2480_v49, %v1847_v21 }
 0xea9   : > { %1903 = vst.msk [vmem:[#allocation11 + $0x8] sm:$0xff] %vm1036_vm5, %v1899_v44  ;;  %v1900_v46 = vadd.f32 %v2178_v39, %v1889_v50  ;;  %v1890_v47 = vmul.f32 %v2177_v36, %v1879_v45 }
 0xeab   : > { %1904 = vst.msk [vmem:[#allocation11 + $0x10] sm:$0xff] %vm1036_vm5, %v1900_v46  ;;  %v1901_v51 = vadd.f32 %v2178_v39, %v1890_v47 }
 0xead   : > { %1905 = vst.msk [vmem:[#allocation11 + $0x18] sm:$0xff] %vm1036_vm5, %v1901_v51 }
 0xeae   : > { %2638 = shalt.err (!%p2635_p9)
}
 0xeaf   : > { %s3442_s16 = sld [smem:[#allocation35_spill]] }
 0xeb5   : > { %s2639_s24 = scalar_lea.hbm %s3442_s16, 512 }
 0xeb6   : > { %p2640_p12 = scmp.ne.s32.totalorder %s3442_s16, %s2639_s24  ;;  %p2645_p13 = scmp.lt.u32.totalorder %s2639_s24, %s3442_s16 }
 0xeb8   : > { %p2641_p0 = pnand %p2640_p12, %p2361_p1 }
 0xeba   : > { %p2642_p3 = pneg %p2641_p0 }
 0xebc   : > { %p2647_p8 = pnand %p2645_p13, %p2642_p3 }
 0xebe   : > { %2650 = shalt.err (!%p2647_p8)
}
 0xebf   : > { %s2713_s6 = smov 128   ;;  %s2714_s15 = smov 8  }
 0xec0   : > { %2334 = dma.vmem_to_hbm [thread:$0]  (%p2361_p1), %s1913_s30, 512, %s3442_s16, [#allocation4], %s2713_s6, %s2713_s6, %s2714_s15  }
 0xec1   : > { %2680 = dma.done.wait (%p2361_p1), [#allocation4], 512  }
 0xec2   : > { %2682 = vsyncadd (%p2361_p1), [#allocation4], 4294966784 }
 0xec3 PF: > { %s3443_s30 = sld [smem:[#allocation17_spill]]  ;;  %s3444_s3 = sld [smem:[#allocation16_spill]] }
 0xec4   : > { %s3445_s29 = sld [smem:[#allocation18_spill]]  ;;  %s3446_s27 = smov %s2689_s28 }
 0xec9   : > { %p31_p7 = scmp.ge.s32.totalorder %s3443_s30, 4   ;;  %s3447_s28 = smov %s3444_s3 }
 0xecb   :  { %33 = sbr.rel (!%p31_p7) target bundleno = 24 (0x18), region = 187 }
 0xed2   :  { %1928 = vsyncpa [#allocation3], 1 }
 0xed3   :  { %1930 = vsyncpa [#allocation3 + $0x1], 1 }
 0xed4   :  { %1931 = vsyncpa [#allocation6], 1 }
 0xed5   :  { %1932 = vsyncpa [#allocation9], 1 }
 0xed6   :  { %1934 = vsyncpa [#allocation9 + $0x1], 1 }
 0xed7   :  { %1935 = vsyncpa [#allocation4], 1 }
 0xed8   :  { %1937 = vsyncpa [#allocation4 + $0x1], 1 }

</bundles_post_ra>
